<compile_context>
chip_gen: v5e
topology: v5e:2x2
jax: 0.10.0
libtpu: 0.0.40
codegen_flags: <defaults>
</compile_context>

<pallas_src>
import functools

import jax
import jax.numpy as jnp
from jax.experimental import pallas as pl
from jax.experimental.pallas import tpu as pltpu


def _pow_gamma(x, gamma):
    if gamma == 2.0:
        return x * x
    return jnp.power(x, gamma)


def _focal_loss_kernel(anchor_ref, cls_ref, reg_ref, ann_iou_ref, ann_gth_ref,
                       out_ref, acc_ref, *, alpha, gamma, ta, tiles_per_split,
                       num_anchors, need_mask):
    s = pl.program_id(1)
    t = pl.program_id(2)
    n_t = pl.num_programs(2)

    # Per-(image, split) raw accumulators: cls_sum, reg_sum, num_pos.
    @pl.when(t == 0)
    def _init():
        acc_ref[...] = jnp.zeros_like(acc_ref)

    tile_idx = s * tiles_per_split + t
    base = pl.multiple_of(tile_idx * ta, 128)

    # ---------------- phase A: anchors-on-lanes IoU / assignment -----------------
    anc = anchor_ref[:, pl.ds(base, ta)].astype(jnp.float32)    # [9, TA]
    bi = ann_iou_ref[0].astype(jnp.float32)                     # [M, 5]
    ann_g = ann_gth_ref[0]                                      # [16, M] bf16
    M = bi.shape[0]

    a_x1, a_y1 = anc[0:1, :], anc[1:2, :]
    a_x2, a_y2 = anc[2:3, :], anc[3:4, :]
    a_area = anc[4:5, :]
    a_cy, a_cx = anc[5:6, :], anc[6:7, :]
    inv_ah, inv_aw = anc[7:8, :], anc[8:9, :]

    b_x1, b_y1 = bi[:, 0:1], bi[:, 1:2]
    b_x2, b_y2 = bi[:, 2:3], bi[:, 3:4]
    b_area = bi[:, 4:5]

    iw = jnp.maximum(jnp.minimum(a_x2, b_x2) - jnp.maximum(a_x1, b_x1), 0.0)
    ih = jnp.maximum(jnp.minimum(a_y2, b_y2) - jnp.maximum(a_y1, b_y1), 0.0)
    inter = iw * ih                                             # [M, TA]
    ua = jnp.maximum(a_area + b_area - inter, 1e-8)

    # IoU thresholds without a divide:  iou >= c  <=>  inter >= c * ua  (ua > 0).
    posf = jnp.max(jnp.where(inter * 2.0 >= ua, 1.0, 0.0), axis=0, keepdims=True)
    negf = 1.0 - jnp.max(jnp.where(inter * 2.5 >= ua, 1.0, 0.0), axis=0, keepdims=True)

    if need_mask:
        # Anchors past the true A (padded last tile) contribute nothing.
        lane = jax.lax.broadcasted_iota(jnp.int32, (1, ta), 1) + tile_idx * ta
        validf = (lane < num_anchors).astype(jnp.float32)
        posf = posf * validf
        negf = negf * validf

    num_pos = jnp.sum(posf)

    # argmax ranking only: approx reciprocal + one Newton step (thresholds stay exact).
    r = pl.reciprocal(ua, approx=True)
    r = r * (2.0 - ua * r)
    iou_r = inter * r
    iou_max = jnp.max(iou_r, axis=0, keepdims=True)             # [1, TA]
    row = jax.lax.broadcasted_iota(jnp.int32, (M, ta), 0)
    argm = jnp.min(jnp.where(iou_r == iou_max, row, M), axis=0, keepdims=True)
    onehot_m = (row == argm).astype(jnp.bfloat16)               # [M, TA]

    # One-hot annotation gather on the MXU: [16, M] @ [M, TA] -> [16, TA] (f32 acc).
    g = jnp.dot(ann_g, onehot_m, preferred_element_type=jnp.float32)
    assigned = g[0:5, :] + g[5:10, :] + g[10:15, :]             # [5, TA] exact f32
    gx1, gy1 = assigned[0:1, :], assigned[1:2, :]
    gx2, gy2 = assigned[2:3, :], assigned[3:4, :]
    gcls = assigned[4:5, :]

    gt_w_raw = gx2 - gx1
    gt_h_raw = gy2 - gy1
    gt_cx = gx1 + 0.5 * gt_w_raw
    gt_cy = gy1 + 0.5 * gt_h_raw
    gt_w = jnp.maximum(gt_w_raw, 1.0)
    gt_h = jnp.maximum(gt_h_raw, 1.0)

    t_dy = (gt_cy - a_cy) * inv_ah
    t_dx = (gt_cx - a_cx) * inv_aw
    t_dh = jnp.log(gt_h * inv_ah)
    t_dw = jnp.log(gt_w * inv_aw)

    # Pack the per-anchor rows and transpose ONCE (XLU) to anchors-on-sublanes.
    pack = jnp.concatenate(
        [t_dy, t_dx, t_dh, t_dw, gcls, posf, negf, jnp.zeros_like(posf)], axis=0)
    pk = jnp.transpose(pack, (1, 0))                            # [TA, 8]

    # ---------------- phase B: natural-layout losses ([TA, C] / [TA, 4]) ---------
    tgt = pk[:, 0:4]
    gcls_col = pk[:, 4:5]
    pos_col = pk[:, 5:6] > 0.5
    neg_col = pk[:, 6:7] > 0.5

    cls = cls_ref[0].astype(jnp.float32)                        # [TA, C]
    cls = jnp.clip(cls, 0.0005, 1.0 - 0.0005)
    C = cls.shape[-1]

    col = jax.lax.broadcasted_iota(jnp.int32, (ta, C), 1)
    is_one = jnp.logical_and(pos_col, col == gcls_col.astype(jnp.int32))
    valid = jnp.logical_or(pos_col, neg_col)

    alpha_factor = jnp.where(is_one, alpha, 1.0 - alpha)
    focal_weight = jnp.where(is_one, 1.0 - cls, cls)
    bce = -jnp.log(jnp.where(is_one, cls, 1.0 - cls))            # single log
    cls_loss = jnp.where(valid, alpha_factor * _pow_gamma(focal_weight, gamma) * bce,
                         0.0)
    cls_sum = jnp.sum(cls_loss)

    reg = reg_ref[0].astype(jnp.float32)                        # [TA, 4]
    d = jnp.abs(tgt - reg)
    rl = jnp.where(d <= 1.0 / 9.0, 0.5 * 9.0 * d * d, d - 0.5 / 9.0)
    reg_sum = jnp.sum(jnp.where(pos_col, rl, 0.0))

    # ---------------- accumulate raw sums across anchor tiles --------------------
    acc_ref[0:1, :] += cls_sum
    acc_ref[1:2, :] += reg_sum
    acc_ref[2:3, :] += num_pos

    @pl.when(t == n_t - 1)
    def _finalize():
        out_ref[0] = acc_ref[...]


def _round_up(x, m):
    return ((x + m - 1) // m) * m


def _pick_anchor_tile(A, C, M, budget_bytes):
    """Largest 128-multiple anchor tile whose live VMEM set fits the budget."""
    # Rough per-anchor-lane live bytes (f32): double-buffered cls + reg input
    # blocks, [M, ta]-ish IoU temporaries, [ta, C]-ish focal temporaries, misc rows.
    per_anchor = 4 * (2 * C + 2 * 4 + 3 * (M + 2) + 3 * C + 24)
    ta = budget_bytes // max(per_anchor, 1)
    ta = (ta // 128) * 128
    ta = max(128, min(ta, 32 * 1024))
    return min(ta, _round_up(A, 128))


def focal_loss_pallas(classifications, regressions, anchors, annotations,
                      alpha=0.25, gamma=2.0):
    B, A, C = classifications.shape
    M = annotations.shape[1]

    # ---- grid-invariant anchor preprocessing, hoisted out of the kernel ----
    anchor = anchors[0].astype(jnp.float32)          # [A, 4] (y1, x1, y2, x2)
    max_length = jnp.max(anchor)
    ay1, ax1, ay2, ax2 = anchor[:, 0], anchor[:, 1], anchor[:, 2], anchor[:, 3]
    n_y1, n_x1 = ay1 / max_length, ax1 / max_length
    n_y2, n_x2 = ay2 / max_length, ax2 / max_length
    n_area = (n_y2 - n_y1) * (n_x2 - n_x1)
    aw, ah = ax2 - ax1, ay2 - ay1
    acx, acy = ax1 + 0.5 * aw, ay1 + 0.5 * ah
    anchor_feat = jnp.stack([n_x1, n_y1, n_x2, n_y2, n_area,
                             acy, acx, 1.0 / ah, 1.0 / aw], axis=0)   # [9, A]

    # ---- annotation preprocessing (tiny tensors) ----
    ann = annotations.astype(jnp.float32)            # [B, M, 5] (x1, y1, x2, y2, label)
    nb = ann[..., :4] / max_length
    nb_area = (nb[..., 2] - nb[..., 0]) * (nb[..., 3] - nb[..., 1])
    ann_iou = jnp.concatenate([nb, nb_area[..., None]], axis=-1)      # [B, M, 5]

    # Exact bf16 hi/mid/lo split of the raw gather rows (f32-exact after the matmul).
    raw = jnp.transpose(ann, (0, 2, 1))              # [B, 5, M]
    hi = raw.astype(jnp.bfloat16)
    r1 = raw - hi.astype(jnp.float32)
    mid = r1.astype(jnp.bfloat16)
    lo = (r1 - mid.astype(jnp.float32)).astype(jnp.bfloat16)
    ann_gth = jnp.concatenate(
        [hi, mid, lo, jnp.zeros((B, 1, M), jnp.bfloat16)], axis=1)    # [B, 16, M]

    # ---- generation-aware VMEM budget and anchor tiling ----
    try:
        vmem_cap = int(pltpu.get_tpu_info().vmem_capacity_bytes)
    except Exception:
        vmem_cap = 64 * 1024 * 1024
    vmem_limit = max(32 * 1024 * 1024, vmem_cap * 3 // 4)
    ta = _pick_anchor_tile(A, C, M, vmem_limit // 2)
    n_tiles = (A + ta - 1) // ta
    # Split the anchor axis over an extra parallel grid dim so both v7x
    # TensorCores stay busy even when B is 1 (or odd).
    n_split = 2 if (n_tiles % 2 == 0 and n_tiles >= 2) else 1
    tps = n_tiles // n_split
    need_mask = (n_tiles * ta != A)

    a_pad = n_tiles * ta
    anchor_slab = anchor_feat
    if a_pad != A:
        anchor_slab = jnp.pad(anchor_feat, ((0, 0), (0, a_pad - A)))

    kernel = functools.partial(
        _focal_loss_kernel, alpha=alpha, gamma=gamma, ta=ta,
        tiles_per_split=tps, num_anchors=A, need_mask=need_mask)

    out = pl.pallas_call(
        kernel,
        out_shape=jax.ShapeDtypeStruct((B * n_split, 3, 128), jnp.float32),
        grid=(B, n_split, tps),
        in_specs=[
            # full [9, A_pad] slab, constant block index -> single DMA for the grid
            pl.BlockSpec((9, a_pad), lambda j, s, t: (0, 0)),
            # natural layouts: no wrapper-side HBM transpose of cls / reg
            pl.BlockSpec((1, ta, C), lambda j, s, t: (j, s * tps + t, 0)),
            pl.BlockSpec((1, ta, 4), lambda j, s, t: (j, s * tps + t, 0)),
            pl.BlockSpec((1, M, 5), lambda j, s, t: (j, 0, 0)),
            pl.BlockSpec((1, 16, M), lambda j, s, t: (j, 0, 0)),
        ],
        out_specs=pl.BlockSpec((1, 3, 128), lambda j, s, t: (j * n_split + s, 0, 0)),
        scratch_shapes=[pltpu.VMEM((3, 128), jnp.float32)],
        compiler_params=pltpu.CompilerParams(
            dimension_semantics=("parallel", "parallel", "arbitrary"),
            vmem_limit_bytes=vmem_limit),
    )(anchor_slab, classifications, regressions, ann_iou, ann_gth)

    sums = out[:, :, 0].reshape(B, n_split, 3).sum(axis=1)      # [B, 3] raw partials
    npos = jnp.maximum(sums[:, 2], 1.0)
    c_per = sums[:, 0] / npos
    r_per = sums[:, 1] / (4.0 * npos)
    c_loss = jnp.mean(c_per)
    r_loss = jnp.mean(r_per)
    return c_loss + r_loss, c_loss, r_loss


def focal_loss_ref(classifications, regressions, anchors, annotations,
                   alpha=0.25, gamma=2.0):
    """Pure-JAX mirror of the PyTorch FocalLoss.forward (fixed M>0 boxes)."""
    B, A, C = classifications.shape
    anchor = anchors[0]
    anchor_w = anchor[:, 3] - anchor[:, 1]
    anchor_h = anchor[:, 2] - anchor[:, 0]
    anchor_cx = anchor[:, 1] + 0.5 * anchor_w
    anchor_cy = anchor[:, 0] + 0.5 * anchor_h
    closses, rlosses = [], []
    for j in range(B):
        bbox = annotations[j]
        classification = jnp.clip(classifications[j], 0.0005, 1.0 - 0.0005)
        regression = regressions[j]

        max_length = jnp.max(anchor)
        a = anchor / max_length
        b = bbox[:, :4] / max_length
        area = (b[:, 2] - b[:, 0]) * (b[:, 3] - b[:, 1])
        iw = jnp.maximum(jnp.minimum(a[:, 3:4], b[None, :, 2])
                         - jnp.maximum(a[:, 1:2], b[None, :, 0]), 0.0)
        ih = jnp.maximum(jnp.minimum(a[:, 2:3], b[None, :, 3])
                         - jnp.maximum(a[:, 0:1], b[None, :, 1]), 0.0)
        ua = jnp.maximum(((a[:, 2] - a[:, 0]) * (a[:, 3] - a[:, 1]))[:, None]
                         + area[None, :] - iw * ih, 1e-8)
        iou = iw * ih / ua

        iou_max = jnp.max(iou, axis=1)
        iou_argmax = jnp.argmax(iou, axis=1)
        assigned = bbox[iou_argmax]
        pos = iou_max >= 0.5
        num_pos = jnp.sum(pos.astype(jnp.float32))

        targets = jnp.full_like(classification, -1.0)
        targets = jnp.where((iou_max < 0.4)[:, None], 0.0, targets)
        onehot = jax.nn.one_hot(assigned[:, 4].astype(jnp.int32), C, dtype=jnp.float32)
        targets = jnp.where(pos[:, None], onehot, targets)

        alpha_factor = jnp.where(targets == 1.0, alpha, 1.0 - alpha)
        focal_weight = jnp.where(targets == 1.0, 1.0 - classification, classification)
        focal_weight = alpha_factor * _pow_gamma(focal_weight, gamma)
        bce = -(targets * jnp.log(classification)
                + (1.0 - targets) * jnp.log(1.0 - classification))
        cls_loss = jnp.where(targets != -1.0, focal_weight * bce, 0.0)
        closses.append(jnp.sum(cls_loss) / jnp.maximum(num_pos, 1.0))

        gt_w_raw = assigned[:, 2] - assigned[:, 0]
        gt_h_raw = assigned[:, 3] - assigned[:, 1]
        gt_cx = assigned[:, 0] + 0.5 * gt_w_raw
        gt_cy = assigned[:, 1] + 0.5 * gt_h_raw
        gt_w = jnp.maximum(gt_w_raw, 1.0)
        gt_h = jnp.maximum(gt_h_raw, 1.0)
        t = jnp.stack([(gt_cy - anchor_cy) / anchor_h,
                       (gt_cx - anchor_cx) / anchor_w,
                       jnp.log(gt_h / anchor_h),
                       jnp.log(gt_w / anchor_w)], axis=1)
        diff = jnp.abs(t - regression)
        rl = jnp.where(diff <= 1.0 / 9.0, 0.5 * 9.0 * diff * diff, diff - 0.5 / 9.0)
        rl = jnp.where(pos[:, None], rl, 0.0)
        rlosses.append(jnp.sum(rl) / (4.0 * jnp.maximum(num_pos, 1.0)))

    c = jnp.mean(jnp.stack(closses))
    r = jnp.mean(jnp.stack(rlosses))
    return c + r, c, r


if __name__ == "__main__":
    B, A, M, C = 2, 128, 8, 8
    key = jax.random.PRNGKey(0)
    k1, k2, k3, k4, k5, k6, k7 = jax.random.split(key, 7)

    # anchors in (y1, x1, y2, x2)
    cy = jax.random.uniform(k1, (A,), minval=8.0, maxval=56.0)
    cx = jax.random.uniform(k2, (A,), minval=8.0, maxval=56.0)
    h = jax.random.uniform(k3, (A,), minval=6.0, maxval=20.0)
    w = jax.random.uniform(k4, (A,), minval=6.0, maxval=20.0)
    anchor = jnp.stack([cy - h / 2, cx - w / 2, cy + h / 2, cx + w / 2], axis=1)
    anchors = anchor[None]                                     # [1, A, 4]

    # annotations: jittered copies of the first M anchors (guarantees positives),
    # converted to (x1, y1, x2, y2, label)
    base = anchor[:M]
    boxes_xyxy = jnp.stack([base[:, 1], base[:, 0], base[:, 3], base[:, 2]], axis=1)
    jitter = jax.random.uniform(k5, (B, M, 4), minval=-0.5, maxval=0.5)
    boxes = boxes_xyxy[None] + jitter
    labels = (jnp.arange(M) % C).astype(jnp.float32)
    labels = jnp.broadcast_to(labels[None, :, None], (B, M, 1))
    annotations = jnp.concatenate([boxes, labels], axis=2)     # [B, M, 5]

    classifications = jax.random.uniform(k6, (B, A, C), minval=0.01, maxval=0.99)
    regressions = jax.random.normal(k7, (B, A, 4)) * 0.1

    loss, c_loss, r_loss = focal_loss_pallas(classifications, regressions,
                                             anchors, annotations)
    jax.block_until_ready((loss, c_loss, r_loss))

    ref_loss, ref_c, ref_r = focal_loss_ref(classifications, regressions,
                                            anchors, annotations)
    assert jnp.allclose(c_loss, ref_c, rtol=2e-3, atol=1e-4), (c_loss, ref_c)
    assert jnp.allclose(r_loss, ref_r, rtol=2e-3, atol=1e-4), (r_loss, ref_r)
    assert jnp.allclose(loss, ref_loss, rtol=2e-3, atol=1e-4), (loss, ref_loss)

    print("KERNEL_OK")
</pallas_src>

<mosaic_0001>
module attributes {stable_mosaic.version = 11 : i64} {
  func.func @_focal_loss_kernel(%arg0: i32, %arg1: i32, %arg2: i32, %arg3: memref<9x128xf32, #tpu.memory_space<vmem>>, %arg4: memref<1x128x8xf32, #tpu.memory_space<vmem>>, %arg5: memref<1x128x4xf32, #tpu.memory_space<vmem>>, %arg6: memref<1x8x5xf32, #tpu.memory_space<vmem>>, %arg7: memref<1x16x8xbf16, #tpu.memory_space<vmem>>, %arg8: memref<1x3x128xf32, #tpu.memory_space<vmem>>, %arg9: memref<3x128xf32, #tpu.memory_space<vmem>>) attributes {dimension_semantics = [#tpu.dimension_semantics<parallel>, #tpu.dimension_semantics<parallel>, #tpu.dimension_semantics<arbitrary>], iteration_bounds = array<i64: 2, 1, 1>, scalar_prefetch = 0 : i64, scratch_operands = 1 : i64, tpu.core_type = #tpu.core_type<tc>, window_params = [{pipeline_mode = #tpu.pipeline_mode<synchronous>, transform_indices = @transform_0, window_bounds = array<i64: 9, 128>}, {transform_indices = @transform_1, window_bounds = array<i64: 1, 128, 8>}, {transform_indices = @transform_2, window_bounds = array<i64: 1, 128, 4>}, {transform_indices = @transform_3, window_bounds = array<i64: 1, 8, 5>}, {transform_indices = @transform_4, window_bounds = array<i64: 1, 16, 8>}, {transform_indices = @transform_5, window_bounds = array<i64: 1, 3, 128>}]} {
    %c0_i32 = arith.constant 0 : i32
    %0 = arith.cmpi eq, %arg2, %c0_i32 : i32
    %1 = arith.extui %0 : i1 to i32
    %c0_i32_0 = arith.constant 0 : i32
    %2 = arith.cmpi ne, %1, %c0_i32_0 : i32
    scf.if %2 {
      %cst_62 = arith.constant 0.000000e+00 : f32
      %207 = vector.broadcast %cst_62 : f32 to vector<3x128xf32>
      %c0_63 = arith.constant 0 : index
      %c0_64 = arith.constant 0 : index
      %208 = vector.load %arg9[%c0_63, %c0_64] : memref<3x128xf32, #tpu.memory_space<vmem>>, vector<3x128xf32>
      tpu.vector_store %arg9[%c0_63, %c0_64], %207 {strides = array<i32>} : memref<3x128xf32, #tpu.memory_space<vmem>>, vector<3x128xf32>,
    } else {
    }
    %c1_i32 = arith.constant 1 : i32
    %3 = arith.muli %arg1, %c1_i32 : i32
    %4 = arith.addi %3, %arg2 : i32
    %c128_i32 = arith.constant 128 : i32
    %5 = arith.muli %4, %c128_i32 : i32
    %6 = tpu.assume_multiple %5, 128 : i32
    %c0 = arith.constant 0 : index
    %7 = arith.index_cast %6 : i32 to index
    %8 = vector.load %arg3[%c0, %7] : memref<9x128xf32, #tpu.memory_space<vmem>>, vector<9x128xf32>
    %c0_1 = arith.constant 0 : index
    %c0_2 = arith.constant 0 : index
    %c0_3 = arith.constant 0 : index
    %9 = vector.load %arg6[%c0_1, %c0_2, %c0_3] : memref<1x8x5xf32, #tpu.memory_space<vmem>>, vector<1x8x5xf32>
    %10 = vector.shape_cast %9 : vector<1x8x5xf32> to vector<8x5xf32>
    %c0_4 = arith.constant 0 : index
    %c0_5 = arith.constant 0 : index
    %c0_6 = arith.constant 0 : index
    %11 = vector.load %arg7[%c0_4, %c0_5, %c0_6] : memref<1x16x8xbf16, #tpu.memory_space<vmem>>, vector<1x16x8xbf16>
    %12 = vector.shape_cast %11 : vector<1x16x8xbf16> to vector<16x8xbf16>
    %13 = vector.extract_strided_slice %8 {offsets = [0, 0], sizes = [1, 128], strides = [1, 1]} : vector<9x128xf32> to vector<1x128xf32>
    %14 = vector.extract_strided_slice %8 {offsets = [1, 0], sizes = [1, 128], strides = [1, 1]} : vector<9x128xf32> to vector<1x128xf32>
    %15 = vector.extract_strided_slice %8 {offsets = [2, 0], sizes = [1, 128], strides = [1, 1]} : vector<9x128xf32> to vector<1x128xf32>
    %16 = vector.extract_strided_slice %8 {offsets = [3, 0], sizes = [1, 128], strides = [1, 1]} : vector<9x128xf32> to vector<1x128xf32>
    %17 = vector.extract_strided_slice %8 {offsets = [4, 0], sizes = [1, 128], strides = [1, 1]} : vector<9x128xf32> to vector<1x128xf32>
    %18 = vector.extract_strided_slice %8 {offsets = [5, 0], sizes = [1, 128], strides = [1, 1]} : vector<9x128xf32> to vector<1x128xf32>
    %19 = vector.extract_strided_slice %8 {offsets = [6, 0], sizes = [1, 128], strides = [1, 1]} : vector<9x128xf32> to vector<1x128xf32>
    %20 = vector.extract_strided_slice %8 {offsets = [7, 0], sizes = [1, 128], strides = [1, 1]} : vector<9x128xf32> to vector<1x128xf32>
    %21 = vector.extract_strided_slice %8 {offsets = [8, 0], sizes = [1, 128], strides = [1, 1]} : vector<9x128xf32> to vector<1x128xf32>
    %22 = vector.extract_strided_slice %10 {offsets = [0, 0], sizes = [8, 1], strides = [1, 1]} : vector<8x5xf32> to vector<8x1xf32>
    %23 = vector.extract_strided_slice %10 {offsets = [0, 1], sizes = [8, 1], strides = [1, 1]} : vector<8x5xf32> to vector<8x1xf32>
    %24 = vector.extract_strided_slice %10 {offsets = [0, 2], sizes = [8, 1], strides = [1, 1]} : vector<8x5xf32> to vector<8x1xf32>
    %25 = vector.extract_strided_slice %10 {offsets = [0, 3], sizes = [8, 1], strides = [1, 1]} : vector<8x5xf32> to vector<8x1xf32>
    %26 = vector.extract_strided_slice %10 {offsets = [0, 4], sizes = [8, 1], strides = [1, 1]} : vector<8x5xf32> to vector<8x1xf32>
    %27 = vector.broadcast %15 : vector<1x128xf32> to vector<8x128xf32>
    %28 = vector.broadcast %24 : vector<8x1xf32> to vector<8x128xf32>
    %29 = arith.minimumf %27, %28 : vector<8x128xf32>
    %30 = vector.broadcast %13 : vector<1x128xf32> to vector<8x128xf32>
    %31 = vector.broadcast %22 : vector<8x1xf32> to vector<8x128xf32>
    %32 = arith.maximumf %30, %31 : vector<8x128xf32>
    %33 = arith.subf %29, %32 : vector<8x128xf32>
    %cst = arith.constant 0.000000e+00 : f32
    %34 = vector.broadcast %cst : f32 to vector<8x128xf32>
    %35 = arith.maximumf %33, %34 : vector<8x128xf32>
    %36 = vector.broadcast %16 : vector<1x128xf32> to vector<8x128xf32>
    %37 = vector.broadcast %25 : vector<8x1xf32> to vector<8x128xf32>
    %38 = arith.minimumf %36, %37 : vector<8x128xf32>
    %39 = vector.broadcast %14 : vector<1x128xf32> to vector<8x128xf32>
    %40 = vector.broadcast %23 : vector<8x1xf32> to vector<8x128xf32>
    %41 = arith.maximumf %39, %40 : vector<8x128xf32>
    %42 = arith.subf %38, %41 : vector<8x128xf32>
    %cst_7 = arith.constant 0.000000e+00 : f32
    %43 = vector.broadcast %cst_7 : f32 to vector<8x128xf32>
    %44 = arith.maximumf %42, %43 : vector<8x128xf32>
    %45 = arith.mulf %35, %44 : vector<8x128xf32>
    %46 = vector.broadcast %17 : vector<1x128xf32> to vector<8x128xf32>
    %47 = vector.broadcast %26 : vector<8x1xf32> to vector<8x128xf32>
    %48 = arith.addf %46, %47 : vector<8x128xf32>
    %49 = arith.subf %48, %45 : vector<8x128xf32>
    %cst_8 = arith.constant 9.99999993E-9 : f32
    %50 = vector.broadcast %cst_8 : f32 to vector<8x128xf32>
    %51 = arith.maximumf %49, %50 : vector<8x128xf32>
    %cst_9 = arith.constant 2.000000e+00 : f32
    %52 = vector.broadcast %cst_9 : f32 to vector<8x128xf32>
    %53 = arith.mulf %45, %52 : vector<8x128xf32>
    %54 = arith.cmpf oge, %53, %51 : vector<8x128xf32>
    %cst_10 = arith.constant 1.000000e+00 : f32
    %cst_11 = arith.constant 0.000000e+00 : f32
    %55 = vector.broadcast %cst_10 : f32 to vector<8x128xf32>
    %56 = vector.broadcast %cst_11 : f32 to vector<8x128xf32>
    %57 = arith.select %54, %55, %56 : vector<8x128xi1>, vector<8x128xf32>
    %cst_12 = arith.constant dense<0xFF800000> : vector<128xf32>
    %58 = vector.multi_reduction <maximumf>, %57, %cst_12 [0] : vector<8x128xf32> to vector<128xf32>
    %59 = vector.shape_cast %58 : vector<128xf32> to vector<1x128xf32>
    %cst_13 = arith.constant 2.500000e+00 : f32
    %60 = vector.broadcast %cst_13 : f32 to vector<8x128xf32>
    %61 = arith.mulf %45, %60 : vector<8x128xf32>
    %62 = arith.cmpf oge, %61, %51 : vector<8x128xf32>
    %cst_14 = arith.constant 1.000000e+00 : f32
    %cst_15 = arith.constant 0.000000e+00 : f32
    %63 = vector.broadcast %cst_14 : f32 to vector<8x128xf32>
    %64 = vector.broadcast %cst_15 : f32 to vector<8x128xf32>
    %65 = arith.select %62, %63, %64 : vector<8x128xi1>, vector<8x128xf32>
    %cst_16 = arith.constant dense<0xFF800000> : vector<128xf32>
    %66 = vector.multi_reduction <maximumf>, %65, %cst_16 [0] : vector<8x128xf32> to vector<128xf32>
    %67 = vector.shape_cast %66 : vector<128xf32> to vector<1x128xf32>
    %cst_17 = arith.constant 1.000000e+00 : f32
    %68 = vector.broadcast %cst_17 : f32 to vector<1x128xf32>
    %69 = arith.subf %68, %67 : vector<1x128xf32>
    %70 = vector.shape_cast %59 : vector<1x128xf32> to vector<1x1x128xf32>
    %cst_18 = arith.constant dense<0.000000e+00> : vector<1xf32>
    %71 = vector.multi_reduction <add>, %70, %cst_18 [1, 2] : vector<1x1x128xf32> to vector<1xf32>
    %72 = vector.shape_cast %71 : vector<1xf32> to vector<1x1x1xf32>
    %73 = vector.extract %72[0, 0, 0] : f32 from vector<1x1x1xf32>
    %74 = tpu.reciprocal %51 {approx = true} : vector<8x128xf32> -> vector<8x128xf32>
    %75 = arith.mulf %51, %74 : vector<8x128xf32>
    %cst_19 = arith.constant 2.000000e+00 : f32
    %76 = vector.broadcast %cst_19 : f32 to vector<8x128xf32>
    %77 = arith.subf %76, %75 : vector<8x128xf32>
    %78 = arith.mulf %74, %77 : vector<8x128xf32>
    %79 = arith.mulf %45, %78 : vector<8x128xf32>
    %cst_20 = arith.constant dense<0xFF800000> : vector<128xf32>
    %80 = vector.multi_reduction <maximumf>, %79, %cst_20 [0] : vector<8x128xf32> to vector<128xf32>
    %81 = vector.shape_cast %80 : vector<128xf32> to vector<1x128xf32>
    %82 = tpu.iota {dimensions = array<i32: 0>} : vector<8x128xi32>
    %83 = vector.broadcast %81 : vector<1x128xf32> to vector<8x128xf32>
    %84 = arith.cmpf oeq, %79, %83 : vector<8x128xf32>
    %c8_i32 = arith.constant 8 : i32
    %85 = vector.broadcast %c8_i32 : i32 to vector<8x128xi32>
    %86 = arith.select %84, %82, %85 : vector<8x128xi1>, vector<8x128xi32>
    %cst_21 = arith.constant dense<2147483647> : vector<128xi32>
    %87 = vector.multi_reduction <minsi>, %86, %cst_21 [0] : vector<8x128xi32> to vector<128xi32>
    %88 = vector.shape_cast %87 : vector<128xi32> to vector<1x128xi32>
    %89 = vector.broadcast %88 : vector<1x128xi32> to vector<8x128xi32>
    %90 = arith.cmpi eq, %82, %89 : vector<8x128xi32>
    %91 = arith.extui %90 : vector<8x128xi1> to vector<8x128xi32>
    %92 = arith.sitofp %91 : vector<8x128xi32> to vector<8x128xf32>
    %93 = arith.truncf %92 : vector<8x128xf32> to vector<8x128xbf16>
    %cst_22 = arith.constant dense<0.000000e+00> : vector<16x128xf32>
    %94 = tpu.matmul %12, %93, %cst_22 {dimension_numbers = #tpu.dot_dimension_numbers<[1], [0], [0], [1], [0, 0, 1, 1], [], []>} : vector<16x8xbf16>, vector<8x128xbf16>, vector<16x128xf32> -> vector<16x128xf32>
    %95 = vector.extract_strided_slice %94 {offsets = [0, 0], sizes = [5, 128], strides = [1, 1]} : vector<16x128xf32> to vector<5x128xf32>
    %96 = vector.extract_strided_slice %94 {offsets = [5, 0], sizes = [5, 128], strides = [1, 1]} : vector<16x128xf32> to vector<5x128xf32>
    %97 = arith.addf %95, %96 : vector<5x128xf32>
    %98 = vector.extract_strided_slice %94 {offsets = [10, 0], sizes = [5, 128], strides = [1, 1]} : vector<16x128xf32> to vector<5x128xf32>
    %99 = arith.addf %97, %98 : vector<5x128xf32>
    %100 = vector.extract_strided_slice %99 {offsets = [0, 0], sizes = [1, 128], strides = [1, 1]} : vector<5x128xf32> to vector<1x128xf32>
    %101 = vector.extract_strided_slice %99 {offsets = [1, 0], sizes = [1, 128], strides = [1, 1]} : vector<5x128xf32> to vector<1x128xf32>
    %102 = vector.extract_strided_slice %99 {offsets = [2, 0], sizes = [1, 128], strides = [1, 1]} : vector<5x128xf32> to vector<1x128xf32>
    %103 = vector.extract_strided_slice %99 {offsets = [3, 0], sizes = [1, 128], strides = [1, 1]} : vector<5x128xf32> to vector<1x128xf32>
    %104 = vector.extract_strided_slice %99 {offsets = [4, 0], sizes = [1, 128], strides = [1, 1]} : vector<5x128xf32> to vector<1x128xf32>
    %105 = arith.subf %102, %100 : vector<1x128xf32>
    %106 = arith.subf %103, %101 : vector<1x128xf32>
    %cst_23 = arith.constant 5.000000e-01 : f32
    %107 = vector.broadcast %cst_23 : f32 to vector<1x128xf32>
    %108 = arith.mulf %107, %105 : vector<1x128xf32>
    %109 = arith.addf %100, %108 : vector<1x128xf32>
    %cst_24 = arith.constant 5.000000e-01 : f32
    %110 = vector.broadcast %cst_24 : f32 to vector<1x128xf32>
    %111 = arith.mulf %110, %106 : vector<1x128xf32>
    %112 = arith.addf %101, %111 : vector<1x128xf32>
    %cst_25 = arith.constant 1.000000e+00 : f32
    %113 = vector.broadcast %cst_25 : f32 to vector<1x128xf32>
    %114 = arith.maximumf %105, %113 : vector<1x128xf32>
    %cst_26 = arith.constant 1.000000e+00 : f32
    %115 = vector.broadcast %cst_26 : f32 to vector<1x128xf32>
    %116 = arith.maximumf %106, %115 : vector<1x128xf32>
    %117 = arith.subf %112, %18 : vector<1x128xf32>
    %118 = arith.mulf %117, %20 : vector<1x128xf32>
    %119 = arith.subf %109, %19 : vector<1x128xf32>
    %120 = arith.mulf %119, %21 : vector<1x128xf32>
    %121 = arith.mulf %116, %20 : vector<1x128xf32>
    %122 = math.log %121 : vector<1x128xf32>
    %123 = arith.mulf %114, %21 : vector<1x128xf32>
    %124 = math.log %123 : vector<1x128xf32>
    %cst_27 = arith.constant 0.000000e+00 : f32
    %125 = vector.broadcast %cst_27 : f32 to vector<1x128xf32>
    %126 = tpu.concatenate %118, %120, %122, %124, %104, %59, %69, %125 in 0 : vector<1x128xf32>, vector<1x128xf32>, vector<1x128xf32>, vector<1x128xf32>, vector<1x128xf32>, vector<1x128xf32>, vector<1x128xf32>, vector<1x128xf32> -> vector<8x128xf32>
    %127 = tpu.transpose %126, [1, 0] : vector<8x128xf32> -> vector<128x8xf32>
    %128 = vector.extract_strided_slice %127 {offsets = [0, 0], sizes = [128, 4], strides = [1, 1]} : vector<128x8xf32> to vector<128x4xf32>
    %129 = vector.extract_strided_slice %127 {offsets = [0, 4], sizes = [128, 1], strides = [1, 1]} : vector<128x8xf32> to vector<128x1xf32>
    %130 = vector.extract_strided_slice %127 {offsets = [0, 5], sizes = [128, 1], strides = [1, 1]} : vector<128x8xf32> to vector<128x1xf32>
    %cst_28 = arith.constant 5.000000e-01 : f32
    %131 = vector.broadcast %cst_28 : f32 to vector<128x1xf32>
    %132 = arith.cmpf ogt, %130, %131 : vector<128x1xf32>
    %133 = vector.extract_strided_slice %127 {offsets = [0, 6], sizes = [128, 1], strides = [1, 1]} : vector<128x8xf32> to vector<128x1xf32>
    %cst_29 = arith.constant 5.000000e-01 : f32
    %134 = vector.broadcast %cst_29 : f32 to vector<128x1xf32>
    %135 = arith.cmpf ogt, %133, %134 : vector<128x1xf32>
    %c0_30 = arith.constant 0 : index
    %c0_31 = arith.constant 0 : index
    %c0_32 = arith.constant 0 : index
    %136 = vector.load %arg4[%c0_30, %c0_31, %c0_32] : memref<1x128x8xf32, #tpu.memory_space<vmem>>, vector<1x128x8xf32>
    %137 = vector.shape_cast %136 : vector<1x128x8xf32> to vector<128x8xf32>
    %cst_33 = arith.constant 5.000000e-04 : f32
    %cst_34 = arith.constant 0.999499976 : f32
    %138 = vector.broadcast %cst_33 : f32 to vector<128x8xf32>
    %139 = arith.maximumf %138, %137 : vector<128x8xf32>
    %140 = vector.broadcast %cst_34 : f32 to vector<128x8xf32>
    %141 = arith.minimumf %140, %139 : vector<128x8xf32>
    %142 = tpu.iota {dimensions = array<i32: 1>} : vector<128x8xi32>
    %143 = arith.fptosi %129 : vector<128x1xf32> to vector<128x1xi32>
    %144 = vector.broadcast %143 : vector<128x1xi32> to vector<128x8xi32>
    %145 = arith.cmpi eq, %142, %144 : vector<128x8xi32>
    %146 = vector.broadcast %132 : vector<128x1xi1> to vector<128x8xi1>
    %147 = arith.andi %146, %145 : vector<128x8xi1>
    %148 = arith.ori %132, %135 : vector<128x1xi1>
    %cst_35 = arith.constant 2.500000e-01 : f32
    %cst_36 = arith.constant 7.500000e-01 : f32
    %149 = vector.broadcast %cst_35 : f32 to vector<128x8xf32>
    %150 = vector.broadcast %cst_36 : f32 to vector<128x8xf32>
    %151 = arith.select %147, %149, %150 : vector<128x8xi1>, vector<128x8xf32>
    %cst_37 = arith.constant 1.000000e+00 : f32
    %152 = vector.broadcast %cst_37 : f32 to vector<128x8xf32>
    %153 = arith.subf %152, %141 : vector<128x8xf32>
    %154 = arith.select %147, %153, %141 : vector<128x8xi1>, vector<128x8xf32>
    %cst_38 = arith.constant 1.000000e+00 : f32
    %155 = vector.broadcast %cst_38 : f32 to vector<128x8xf32>
    %156 = arith.subf %155, %141 : vector<128x8xf32>
    %157 = arith.select %147, %141, %156 : vector<128x8xi1>, vector<128x8xf32>
    %158 = math.log %157 : vector<128x8xf32>
    %cst_39 = arith.constant 0.000000e+00 : f32
    %159 = vector.broadcast %cst_39 : f32 to vector<128x8xf32>
    %160 = arith.subf %159, %158 : vector<128x8xf32>
    %161 = arith.mulf %154, %154 : vector<128x8xf32>
    %162 = arith.mulf %151, %161 : vector<128x8xf32>
    %163 = arith.mulf %162, %160 : vector<128x8xf32>
    %cst_40 = arith.constant 0.000000e+00 : f32
    %164 = vector.shape_cast %148 : vector<128x1xi1> to vector<128x1xi1>
    %165 = vector.broadcast %164 : vector<128x1xi1> to vector<128x8xi1>
    %166 = vector.broadcast %cst_40 : f32 to vector<128x8xf32>
    %167 = arith.select %165, %163, %166 : vector<128x8xi1>, vector<128x8xf32>
    %168 = vector.shape_cast %167 : vector<128x8xf32> to vector<1x128x8xf32>
    %cst_41 = arith.constant dense<0.000000e+00> : vector<1xf32>
    %169 = vector.multi_reduction <add>, %168, %cst_41 [1, 2] : vector<1x128x8xf32> to vector<1xf32>
    %170 = vector.shape_cast %169 : vector<1xf32> to vector<1x1x1xf32>
    %171 = vector.extract %170[0, 0, 0] : f32 from vector<1x1x1xf32>
    %c0_42 = arith.constant 0 : index
    %c0_43 = arith.constant 0 : index
    %c0_44 = arith.constant 0 : index
    %172 = vector.load %arg5[%c0_42, %c0_43, %c0_44] : memref<1x128x4xf32, #tpu.memory_space<vmem>>, vector<1x128x4xf32>
    %173 = vector.shape_cast %172 : vector<1x128x4xf32> to vector<128x4xf32>
    %174 = arith.subf %128, %173 : vector<128x4xf32>
    %175 = math.absf %174 : vector<128x4xf32>
    %cst_45 = arith.constant 0.111111112 : f32
    %176 = vector.broadcast %cst_45 : f32 to vector<128x4xf32>
    %177 = arith.cmpf ole, %175, %176 : vector<128x4xf32>
    %cst_46 = arith.constant 4.500000e+00 : f32
    %178 = vector.broadcast %cst_46 : f32 to vector<128x4xf32>
    %179 = arith.mulf %178, %175 : vector<128x4xf32>
    %180 = arith.mulf %179, %175 : vector<128x4xf32>
    %cst_47 = arith.constant 0.055555556 : f32
    %181 = vector.broadcast %cst_47 : f32 to vector<128x4xf32>
    %182 = arith.subf %175, %181 : vector<128x4xf32>
    %183 = arith.select %177, %180, %182 : vector<128x4xi1>, vector<128x4xf32>
    %cst_48 = arith.constant 0.000000e+00 : f32
    %184 = vector.shape_cast %132 : vector<128x1xi1> to vector<128x1xi1>
    %185 = vector.broadcast %184 : vector<128x1xi1> to vector<128x4xi1>
    %186 = vector.broadcast %cst_48 : f32 to vector<128x4xf32>
    %187 = arith.select %185, %183, %186 : vector<128x4xi1>, vector<128x4xf32>
    %188 = vector.shape_cast %187 : vector<128x4xf32> to vector<1x128x4xf32>
    %cst_49 = arith.constant dense<0.000000e+00> : vector<1xf32>
    %189 = vector.multi_reduction <add>, %188, %cst_49 [1, 2] : vector<1x128x4xf32> to vector<1xf32>
    %190 = vector.shape_cast %189 : vector<1xf32> to vector<1x1x1xf32>
    %191 = vector.extract %190[0, 0, 0] : f32 from vector<1x1x1xf32>
    %c0_50 = arith.constant 0 : index
    %c0_51 = arith.constant 0 : index
    %192 = vector.load %arg9[%c0_50, %c0_51] : memref<3x128xf32, #tpu.memory_space<vmem>>, vector<1x128xf32>
    %193 = vector.broadcast %171 : f32 to vector<1x128xf32>
    %194 = arith.addf %192, %193 : vector<1x128xf32>
    %c0_52 = arith.constant 0 : index
    %c0_53 = arith.constant 0 : index
    %195 = vector.load %arg9[%c0_52, %c0_53] : memref<3x128xf32, #tpu.memory_space<vmem>>, vector<1x128xf32>
    tpu.vector_store %arg9[%c0_52, %c0_53], %194 {strides = array<i32>} : memref<3x128xf32, #tpu.memory_space<vmem>>, vector<1x128xf32>,
    %c1 = arith.constant 1 : index
    %c0_54 = arith.constant 0 : index
    %196 = vector.load %arg9[%c1, %c0_54] : memref<3x128xf32, #tpu.memory_space<vmem>>, vector<1x128xf32>
    %197 = vector.broadcast %191 : f32 to vector<1x128xf32>
    %198 = arith.addf %196, %197 : vector<1x128xf32>
    %c1_55 = arith.constant 1 : index
    %c0_56 = arith.constant 0 : index
    %199 = vector.load %arg9[%c1_55, %c0_56] : memref<3x128xf32, #tpu.memory_space<vmem>>, vector<1x128xf32>
    tpu.vector_store %arg9[%c1_55, %c0_56], %198 {strides = array<i32>} : memref<3x128xf32, #tpu.memory_space<vmem>>, vector<1x128xf32>,
    %c2 = arith.constant 2 : index
    %c0_57 = arith.constant 0 : index
    %200 = vector.load %arg9[%c2, %c0_57] : memref<3x128xf32, #tpu.memory_space<vmem>>, vector<1x128xf32>
    %201 = vector.broadcast %73 : f32 to vector<1x128xf32>
    %202 = arith.addf %200, %201 : vector<1x128xf32>
    %c2_58 = arith.constant 2 : index
    %c0_59 = arith.constant 0 : index
    %203 = vector.load %arg9[%c2_58, %c0_59] : memref<3x128xf32, #tpu.memory_space<vmem>>, vector<1x128xf32>
    tpu.vector_store %arg9[%c2_58, %c0_59], %202 {strides = array<i32>} : memref<3x128xf32, #tpu.memory_space<vmem>>, vector<1x128xf32>,
    %c0_i32_60 = arith.constant 0 : i32
    %204 = arith.cmpi eq, %arg2, %c0_i32_60 : i32
    %205 = arith.extui %204 : i1 to i32
    %c0_i32_61 = arith.constant 0 : i32
    %206 = arith.cmpi ne, %205, %c0_i32_61 : i32
    scf.if %206 {
      %c0_62 = arith.constant 0 : index
      %c0_63 = arith.constant 0 : index
      %207 = vector.load %arg9[%c0_62, %c0_63] : memref<3x128xf32, #tpu.memory_space<vmem>>, vector<3x128xf32>
      %c0_64 = arith.constant 0 : index
      %c0_65 = arith.constant 0 : index
      %c0_66 = arith.constant 0 : index
      %208 = vector.load %arg8[%c0_64, %c0_65, %c0_66] : memref<1x3x128xf32, #tpu.memory_space<vmem>>, vector<1x3x128xf32>
      %209 = vector.shape_cast %208 : vector<1x3x128xf32> to vector<3x128xf32>
      %210 = vector.shape_cast %207 : vector<3x128xf32> to vector<1x3x128xf32>
      tpu.vector_store %arg8[%c0_64, %c0_65, %c0_66], %210 {strides = array<i32>} : memref<1x3x128xf32, #tpu.memory_space<vmem>>, vector<1x3x128xf32>,
    } else {
    }
    return
  }
  func.func @transform_0(%arg0: i32, %arg1: i32, %arg2: i32) -> (i32, i32) {
    %c0_i32 = arith.constant 0 : i32
    %c0_i32_0 = arith.constant 0 : i32
    %c0_i32_1 = arith.constant 0 : i32
    return %c0_i32, %c0_i32_0 : i32, i32
  }
  func.func @transform_1(%arg0: i32, %arg1: i32, %arg2: i32) -> (i32, i32, i32) {
    %c1_i32 = arith.constant 1 : i32
    %0 = arith.muli %arg1, %c1_i32 : i32
    %1 = arith.addi %0, %arg2 : i32
    %c0_i32 = arith.constant 0 : i32
    %c0_i32_0 = arith.constant 0 : i32
    return %arg0, %1, %c0_i32 : i32, i32, i32
  }
  func.func @transform_2(%arg0: i32, %arg1: i32, %arg2: i32) -> (i32, i32, i32) {
    %c1_i32 = arith.constant 1 : i32
    %0 = arith.muli %arg1, %c1_i32 : i32
    %1 = arith.addi %0, %arg2 : i32
    %c0_i32 = arith.constant 0 : i32
    %c0_i32_0 = arith.constant 0 : i32
    return %arg0, %1, %c0_i32 : i32, i32, i32
  }
  func.func @transform_3(%arg0: i32, %arg1: i32, %arg2: i32) -> (i32, i32, i32) {
    %c0_i32 = arith.constant 0 : i32
    %c0_i32_0 = arith.constant 0 : i32
    %c0_i32_1 = arith.constant 0 : i32
    return %arg0, %c0_i32, %c0_i32_0 : i32, i32, i32
  }
  func.func @transform_4(%arg0: i32, %arg1: i32, %arg2: i32) -> (i32, i32, i32) {
    %c0_i32 = arith.constant 0 : i32
    %c0_i32_0 = arith.constant 0 : i32
    %c0_i32_1 = arith.constant 0 : i32
    return %arg0, %c0_i32, %c0_i32_0 : i32, i32, i32
  }
  func.func @transform_5(%arg0: i32, %arg1: i32, %arg2: i32) -> (i32, i32, i32) {
    %c1_i32 = arith.constant 1 : i32
    %0 = arith.muli %arg0, %c1_i32 : i32
    %1 = arith.addi %0, %arg1 : i32
    %c0_i32 = arith.constant 0 : i32
    %c0_i32_0 = arith.constant 0 : i32
    %c0_i32_1 = arith.constant 0 : i32
    return %1, %c0_i32, %c0_i32_0 : i32, i32, i32
  }
}

</mosaic_0001>

<bundles_post_ra>
// kernel: tpu_custom_call.1
= control target key start
LH: loop header
LB: loop body
LE: loop exit
PB: predicated region body
PF: predicated region fallthrough
CT: control target
= control target key end

     0   :  { %s1786_s18 = smov 0   ;;  %s1788_s19 = smov 0   ;;  %s2516_s0 = inlined_call_operand.vmem [shape: f32[9,128], index: 0, kind: input, shape index: {}]   ;;  %s2517_s1 = inlined_call_operand.vmem [shape: f32[2,128,8], index: 1, kind: input, shape index: {}]   ;;  %s2518_s2 = inlined_call_operand.vmem [shape: f32[2,128,4], index: 2, kind: input, shape index: {}]   ;;  %s2519_s3 = inlined_call_operand.vmem [shape: f32[2,8,5], index: 3, kind: input, shape index: {}]   ;;  %s2520_s4 = inlined_call_operand.vmem [shape: bf16[2,16,8], index: 4, kind: input, shape index: {}]   ;;  %s2521_s5 = inlined_call_operand.vmem [shape: f32[2,3,128], index: 5, kind: output, shape index: {}]  }
   0x1   :  { %s1790_s20 = smov 0  }
   0x2 LB: > { %s34_s21 = sadd.s32 1, %s1741_s19  ;;  %p1508_p0 = scmp.ge.s32.totalorder %s1745_s20, 1  ;;  %s1745_s20 = sphi %s1790_s20, %s15_s20   ;;  %s1741_s19 = sphi %s1788_s19, %s2590_s19   ;;  %s1737_s18 = sphi %s1786_s18, %s2589_s18  }
   0x3   : > { %p36_p1 = scmp.ge.s32.totalorder %s34_s21, 2  ;;  %p259_p2 = scmp.lt.s32.totalorder %s1745_s20, 3 }
   0x5   : > { %s2592_s21 = smov (%p36_p1, %s34_s21), 0  ;;  %p260_p3 = pnand %p1508_p0, %p259_p2 }
   0x7   : > { %263 = sbr.rel (%p260_p3) target bundleno = 1144 (0x478), region = 40 }
   0xc   : > { %p313_p4 = scmp.lt.s32.totalorder %s1737_s18, 1  ;;  %v1747_v0 = vmov 3   ;;  %v1748_v1 = vmov 2   ;;  %v2537_v2 = vmov 4   ;;  %v1750_v4 = vmov 1   ;;  %v1818_v9 = vld [vmem:[%s2516_s0] sm:$0xff] }
   0xd   : > { %1666 = vset.pattern.permute.xlu1 %v1747_v0  ;;  %1664 = vset.pattern.permute.xlu0 %v1748_v1  ;;  %v2534_v5 = vmov 0   ;;  %v1752_v6 = vmov 0.0   ;;  %v381_v10 = vperm.slane %v1818_v9, 3  ;;  %v366_v11 = vperm.slane %v1818_v9, 2  ;;  %s1754_s13 = smov 127  }
   0xe   : > { %s2594_s18 = smov (!%p313_p4, %s1737_s18), 1  ;;  %1668 = vset.pattern.permute.xlu2 %v2537_v2  ;;  %355 = vst [vmem:[#allocation2] sm:$0x7] %v1752_v6  ;;  %v387_v12 = vperm.slane %v1818_v9, 1  ;;  %v373_v13 = vperm.slane %v1818_v9, 0  ;;  %v396_v16 = vperm.slane %v1818_v9, 4  ;;  %v445_v48 = vlaneseq }
   0xf   : > { %s1513_s22 = sshll.u32 %s2594_s18, 3  ;;  %vm423_vm2 = vcmask 1040384   ;;  %vm471_vm8 = vcmask 1043456   ;;  %vm2522_vm9 = vcmask 64512   ;;  %vm491_vm10 = vcmask 1042432   ;;  %s1541_s9 = sshll.u32 %s2594_s18, 7 }
  0x10   : > { %s338_s25 = scalar_lea.vmem %s2519_s3, %s1513_s22  ;;  %v446_v51 = vshrl.u32 %v445_v48, 7  ;;  %s343_s30 = scalar_lea.vmem %s2520_s4, %s1513_s22  ;;  %vm541_vm11 = vcmask 1041408   ;;  %vm545_vm12 = vcmask 1044480   ;;  %vm547_vm13 = vcmask 1045504  }
  0x11   : > { %v363_v3 = vld [vmem:[%s338_s25] sm:$0xff]  ;;  %vm549_vm14 = vcmask 1046528   ;;  %s1870_s12 = scalar_lea.vmem %s2518_s2, %s1541_s9  ;;  %s2079_s16 = scalar_lea.vmem %s2517_s1, %s1541_s9 }
  0x12   : > { %383 = vperm.xlu1 %1666, %v363_v3   ;;  %369 = vperm.xlu0 %1664, %v363_v3   ;;  %v1544_v63 = vld [vmem:[%s343_s30] sm:$0xff]  ;;  %s1516_s23 = sshll.u32 %s2594_s18, 2 }
  0x13   : > { %398 = vperm.xlu2 %1668, %v363_v3   ;;  %s348_s26 = scalar_lea.vmem %s2521_s5, %s1516_s23 }
  0x1a   : > { %1667 = vset.pattern.permute.xlu1 %v1750_v4  ;;  %1665 = vset.pattern.permute.xlu0 %v2534_v5 }
  0x1b   : > { %389 = vperm.xlu1 %1667, %v363_v3   ;;  %375 = vperm.xlu0 %1665, %v363_v3  }
  0x6d   : > { %v399_v21 = vpop.permute.xlu2 %398 }
  0x6e   : > { %v401_v26 = vadd.f32 %v399_v21, %v396_v16  ;;  %v362_v21 = vld [vmem:[%s2516_s0 + $0x8] sm:$0x1] }
  0x84   : > { %v384_v7 = vpop.permute.xlu1 %383  ;;  %v370_v8 = vpop.permute.xlu0 %369 }
  0x85   : > { %v386_v17 = vmin.f32 %v381_v10, %v384_v7  ;;  %v372_v18 = vmin.f32 %v366_v11, %v370_v8 }
  0x8d   : > { %v390_v14 = vpop.permute.xlu1 %389  ;;  %v376_v15 = vpop.permute.xlu0 %375 }
  0x8e   : > { %v392_v19 = vmax.f32 %v387_v12, %v390_v14  ;;  %v378_v20 = vmax.f32 %v373_v13, %v376_v15 }
  0x90   : > { %v393_v22 = vsub.f32 %v386_v17, %v392_v19  ;;  %v379_v23 = vsub.f32 %v372_v18, %v378_v20 }
  0x92   : > { %v394_v24 = vmax.f32 %v393_v22, 0.0  ;;  %v380_v25 = vmax.f32 %v379_v23, 0.0  ;;  %v1378_v23 = vld [vmem:[#allocation2 + $0x2] sm:$0x1] }
  0x94   : > { %v395_v27 = vmul.f32 %v394_v24, %v380_v25 }
  0x96   : > { %v402_v28 = vsub.f32 %v401_v26, %v395_v27  ;;  %v1827_v30 = vmul.f32 2.5, %v395_v27  ;;  %v404_v31 = vmul.f32 2.0, %v395_v27  ;;  %v511_v26 = vrot.slane %v1818_v9, 4 }
  0x98   : > { %v1825_v29 = vmax.f32 %v402_v28, 1e-08 }
  0x9a   : > { %vm414_vm0 = vcmp.ge.f32.partialorder %v1827_v30, %v1825_v29  ;;  %1685 = vrcp.f32 %v1825_v29  ;;  %vm405_vm1 = vcmp.ge.f32.partialorder %v404_v31, %v1825_v29 }
  0x9b   : > { %v406_v32 = vsel %vm405_vm1, 1.0, %v1752_v6  ;;  %v415_v15 = vsel %vm414_vm0, 1.0, %v1752_v6 }
  0x9c   : > { %v407_v33 = vrot.slane %v406_v32, 4  ;;  %v416_v19 = vrot.slane %v415_v15, 4 }
  0x9e   : > { %v408_v34 = vmax.f32 %v406_v32, %v407_v33  ;;  %v417_v24 = vmax.f32 %v415_v15, %v416_v19  ;;  %v514_v33 = vrot.slane %v1818_v9, 6 }
  0xa0   : > { %v1686_v35 = vpop.eup %1685  ;;  %v409_v36 = vrot.slane %v408_v34, 2  ;;  %v418_v31 = vrot.slane %v417_v24, 2 }
  0xa1   : > { %v435_v37 = vmul.f32 %v1686_v35, %v1825_v29 }
  0xa2   : > { %v410_v38 = vmax.f32 %v408_v34, %v409_v36 }
  0xa3   : > { %v436_v39 = vsub.f32 2.0, %v435_v37  ;;  %v419_v37 = vmax.f32 %v417_v24, %v418_v31 }
  0xa4   : > { %v411_v40 = vrot.slane %v410_v38, 1 }
  0xa5   : > { %v437_v41 = vmul.f32 %v1686_v35, %v436_v39 }
  0xa6   : > { %v1835_v42 = vmax.f32 %v410_v38, %v411_v40 }
  0xa7   : > { %v438_v43 = vmul.f32 %v437_v41, %v395_v27  ;;  %v523_v27 = vrot.slane %v362_v21, 6 }
  0xa8   : > { %v424_v44 = vsel %vm423_vm2, %v1835_v42, 0.0 }
  0xa9   : > { %425 = vadd.xlane.f32.xlu2 %v424_v44  ;;  %v439_v45 = vrot.slane %v438_v43, 4 }
  0xab   : > { %v440_v46 = vmax.f32 %v438_v43, %v439_v45 }
  0xad   : > { %v441_v47 = vrot.slane %v440_v46, 2 }
  0xaf   : > { %v442_v49 = vmax.f32 %v440_v46, %v441_v47 }
  0xb1   : > { %v443_v50 = vrot.slane %v442_v49, 1 }
  0xb3   : > { %v444_v52 = vmax.f32 %v442_v49, %v443_v50 }
  0xb5   : > { %vm447_vm3 = vcmp.eq.f32.partialorder %v438_v43, %v444_v52  ;;  %v420_v43 = vrot.slane %v419_v37, 1 }
  0xb6   : > { %v448_v53 = vsel %vm447_vm3, %v446_v51, 8 }
  0xb7   : > { %v449_v54 = vrot.slane %v448_v53, 4  ;;  %v421_v9 = vmax.f32 %v419_v37, %v420_v43 }
  0xb9   : > { %vm450_vm4 = vcmp.lt.s32.totalorder %v448_v53, %v449_v54 }
  0xba   : > { %v451_v55 = vsel %vm450_vm4, %v448_v53, %v449_v54 }
  0xbb   : > { %v452_v56 = vrot.slane %v451_v55, 2 }
  0xbd   : > { %vm453_vm5 = vcmp.lt.s32.totalorder %v451_v55, %v452_v56 }
  0xbe   : > { %v454_v57 = vsel %vm453_vm5, %v451_v55, %v452_v56  ;;  %v422_v56 = vsub.f32 1.0, %v421_v9 }
  0xbf   : > { %v455_v58 = vrot.slane %v454_v57, 1 }
  0xc1   : > { %vm456_vm6 = vcmp.lt.s32.totalorder %v454_v57, %v455_v58 }
  0xc2   : > { %v457_v59 = vsel %vm456_vm6, %v454_v57, %v455_v58 }
  0xc3   : > { %vm458_vm7 = vcmp.eq.s32.totalorder %v446_v51, %v457_v59 }
  0xc4   : > { %v1517_v60 = vsel %vm458_vm7, 1.0, %v1752_v6 }
  0xc5   : > { %v461_v61 = vpack.c.bf16 %v1517_v60, %v1517_v60 }
  0xc7   : > { %v473_v62 = vsel %vm471_vm8, %v461_v61, 0  ;;  %v2531_v61 = vmov 5  }
  0xc8   : > { %482 = vmatpush.bf16.msra.mxu0 %v473_v62  ;;  %1671 = vset.pattern.permute.xlu0 %v2531_v61 }
  0xcb   : > { %1522 = vmatmul.msk.bf16.vlgmr.msra.gmra.mxu0 %vm2522_vm9, %v1544_v63 }
 0x11c   : > { %v426_v0 = vpop.xlane.xlu2 %425 }
 0x11d   : > { %v427_v1 = vrot.slane %v426_v0, 4 }
 0x11f   : > { %v428_v3 = vadd.f32 %v427_v1, %v426_v0  ;;  %v1880_v0 = vld [vmem:[%s1870_s12 + $0x8] sm:$0xff] }
 0x121   : > { %v429_v4 = vrot.slane %v428_v3, 2 }
 0x123   : > { %v430_v7 = vadd.f32 %v429_v4, %v428_v3 }
 0x125   : > { %v431_v8 = vrot.slane %v430_v7, 1 }
 0x127   : > { %v432_v10 = vadd.f32 %v431_v8, %v430_v7  ;;  %v1891_v7 = vld [vmem:[%s1870_s12 + $0x10] sm:$0xff] }
 0x129   : > { %1545 = vpush %v432_v10 }
 0x148   : > { %v484_v11 = vpop.f32.mrf.mxu0 }
 0x149   : > { %v492_v13 = vrot.slane %v484_v11, 5 }
 0x150   : > { %v486_v12 = vpop.f32.mrf.mxu0 }
 0x151   : > { %v493_v14 = vrot.slane %v486_v12, 5  ;;  %v497_v18 = vrot.slane %v486_v12, 2 }
 0x153   : > { %v494_v16 = vsel %vm491_vm10, %v492_v13, %v493_v14 }
 0x154   : > { %v496_v17 = vadd.f32 %v494_v16, %v484_v11  ;;  %v1898_v11 = vld [vmem:[%s1870_s12 + $0x18] sm:$0xff] }
 0x156   : > { %v499_v20 = vadd.f32 %v497_v18, %v496_v17  ;;  %v1908_v18 = vld [vmem:[%s1870_s12 + $0x20] sm:$0xff] }
 0x158   : > { %v501_v22 = vrot.slane %v499_v20, 6 }
 0x15a   : > { %v503_v25 = vsub.f32 %v499_v20, %v501_v22  ;;  %s1546_s8 = spop %1545 }
 0x15b   : > { %v1379_v28 = vstv %s1546_s8 }
 0x15c   : > { %v504_v6 = vmul.f32 0.5, %v503_v25  ;;  %v509_v29 = vmax.f32 %v503_v25, 1.0  ;;  %v1380_v30 = vadd.f32 %v1379_v28, %v1378_v23  ;;  %v1924_v23 = vld [vmem:[%s1870_s12 + $0x28] sm:$0xff] }
 0x15e   : > { %v506_v32 = vrot.slane %v504_v6, 2  ;;  %v519_v34 = vmul.f32 %v511_v26, %v509_v29  ;;  %v525_v35 = vmul.f32 %v523_v27, %v509_v29  ;;  %1381 = vst [vmem:[#allocation2 + $0x2] sm:$0x1] %v1380_v30  ;;  %v1936_v27 = vld [vmem:[%s1870_s12 + $0x30] sm:$0xff] }
 0x160   : > { %v508_v36 = vadd.f32 %v506_v32, %v499_v20  ;;  %1687 = vlog2.f32 %v519_v34 }
 0x161   : > { %1689 = vlog2.f32 %v525_v35 }
 0x162   : > { %v513_v38 = vsub.f32 %v508_v36, %v511_v26  ;;  %v517_v39 = vsub.f32 %v508_v36, %v514_v33  ;;  %v1961_v36 = vld [vmem:[%s1870_s12 + $0x38] sm:$0xff] }
 0x164   : > { %v516_v40 = vmul.f32 %v514_v33, %v513_v38  ;;  %v518_v41 = vmul.f32 %v517_v39, %v362_v21 }
 0x166   : > { %v1688_v44 = vpop.eup %1687  ;;  %v529_v45 = vrot.slane %v516_v40, 1  ;;  %v532_v46 = vrot.slane %v518_v41, 7 }
 0x167   : > { %v1690_v47 = vpop.eup %1689  ;;  %v521_v49 = vmul.f32 0.6931472, %v1688_v44  ;;  %v1975_v44 = vld [vmem:[%s1870_s12 + $0x40] sm:$0xff] }
 0x168   : > { %v527_v50 = vmul.f32 0.6931472, %v1690_v47  ;;  %v540_v53 = vsel %vm423_vm2, %v529_v45, %v532_v46  ;;  %v599_v45 = vld [vmem:[%s2079_s16] sm:$0xff] }
 0x169   : > { %v535_v51 = vrot.slane %v521_v49, 1 }
 0x16a   : > { %v538_v52 = vrot.slane %v527_v50, 7 }
 0x16b   : > { %v542_v54 = vsel %vm541_vm11, %v540_v53, %v535_v51 }
 0x16c   : > { %v543_v55 = vsel %vm491_vm10, %v542_v54, %v538_v52 }
 0x16d   : > { %v544_v57 = vsel %vm471_vm8, %v543_v55, %v499_v20  ;;  %v1991_v55 = vld [vmem:[%s1870_s12 + $0x48] sm:$0xff] }
 0x16e   : > { %v546_v58 = vsel %vm545_vm12, %v544_v57, %v1835_v42  ;;  %v1873_v42 = vld [vmem:[%s1870_s12] sm:$0xff] }
 0x16f   : > { %v548_v59 = vsel %vm547_vm13, %v546_v58, %v422_v56 }
 0x170   : > { %v550_v60 = vsel %vm549_vm14, %v548_v59, 0.0 }
 0x171   : > { %551 = vxpose.xlu1.b32.start.end [1/1] (short) %v550_v60, 128 }
 0x1c4   : > { %1669 = vset.pattern.permute.xlu1 %v2537_v2 }
 0x215   : > { %v1875_v62 = vpop.trf.xlu1 }
 0x216   : > { %v1201_v63 = vsub.f32 %v1875_v62, %v1873_v42  ;;  %vm583_vm2 = vcmp.gt.f32.partialorder %v1875_v62, 0.5  ;;  %v1548_v39 = vceil.f32 %v1875_v62  ;;  %v1549_v40 = vfloor.f32 %v1875_v62 }
 0x217   : > { %v729_v22 = vsel %vm583_vm2, 1, %v2534_v5  ;;  %vm1547_vm8 = vcmp.lt.s32.totalorder %v1875_v62, 0 }
 0x218   : > { %v1550_v41 = vsel %vm1547_vm8, %v1548_v39, %v1549_v40 }
 0x219   : > { %v1551_v46 = vcvt.f32.s32 %v1550_v41 }
 0x21d   : > { %v1882_v1 = vpop.trf.xlu1 }
 0x21e   : > { %v1202_v3 = vsub.f32 %v1882_v1, %v1880_v0  ;;  %vm584_vm15 = vcmp.gt.f32.partialorder %v1882_v1, 0.5  ;;  %v1553_v47 = vceil.f32 %v1882_v1  ;;  %v1554_v49 = vfloor.f32 %v1882_v1 }
 0x21f   : > { %v730_v4 = vsel %vm584_vm15, 1, %v2534_v5  ;;  %vm1552_vm10 = vcmp.lt.s32.totalorder %v1882_v1, 0 }
 0x220   : > { %749 = vperm.xlu0 %1671, %v730_v4   ;;  %v1555_v50 = vsel %vm1552_vm10, %v1553_v47, %v1554_v49  ;;  %v2036_v47 = vand.u32 127, %v445_v48 }
 0x221   : > { %v1556_v9 = vcvt.f32.s32 %v1555_v50  ;;  %v1217_v50 = vand.u32 2147483647, %v1201_v63 }
 0x223   : > { %v1249_v48 = vmul.f32 4.5, %v1217_v50 }
 0x225   : > { %v1893_v8 = vpop.trf.xlu1 }
 0x226   : > { %v1203_v10 = vsub.f32 %v1893_v8, %v1891_v7  ;;  %vm585_vm3 = vcmp.gt.f32.partialorder %v1893_v8, 0.5  ;;  %v1558_v51 = vceil.f32 %v1893_v8  ;;  %v1559_v52 = vfloor.f32 %v1893_v8 }
 0x227   : > { %v731_v26 = vsel %vm585_vm3, 1, %v2534_v5  ;;  %vm1557_vm11 = vcmp.lt.s32.totalorder %v1893_v8, 0 }
 0x228   : > { %v1560_v53 = vsel %vm1557_vm11, %v1558_v51, %v1559_v52 }
 0x229   : > { %v1561_v56 = vcvt.f32.s32 %v1560_v53 }
 0x22d   : > { %v1900_v12 = vpop.trf.xlu1 }
 0x22e   : > { %v1563_v13 = vceil.f32 %v1900_v12  ;;  %v1564_v14 = vfloor.f32 %v1900_v12  ;;  %v1204_v15 = vsub.f32 %v1900_v12, %v1898_v11  ;;  %vm1562_vm0 = vcmp.lt.s32.totalorder %v1900_v12, 0 }
 0x22f   : > { %vm586_vm4 = vcmp.gt.f32.partialorder %v1900_v12, 0.5 }
 0x230   : > { %v1565_v16 = vsel %vm1562_vm0, %v1563_v13, %v1564_v14  ;;  %v732_v31 = vsel %vm586_vm4, 1, %v2534_v5 }
 0x231   : > { %v1566_v17 = vcvt.f32.s32 %v1565_v16 }
 0x233   : > { %675 = vperm.xlu2 %1668, %v1566_v17   ;;  %v2004_v17 = vld [vmem:[%s1870_s12 + $0x50] sm:$0xff] }
 0x235   : > { %v1910_v19 = vpop.trf.xlu1 }
 0x236   : > { %v1205_v20 = vsub.f32 %v1910_v19, %v1908_v18  ;;  %vm2536_vm1 = vcmp.gt.f32.partialorder %v1910_v19, 0.5  ;;  %v1568_v58 = vceil.f32 %v1910_v19  ;;  %v1569_v59 = vfloor.f32 %v1910_v19 }
 0x237   : > { %v733_v21 = vsel %vm2536_vm1, 1, %v2534_v5  ;;  %vm1567_vm12 = vcmp.lt.s32.totalorder %v1910_v19, 0 }
 0x238   : > { %758 = vperm.xlu0 %1671, %v733_v21   ;;  %v1570_v60 = vsel %vm1567_vm12, %v1568_v58, %v1569_v59  ;;  %v1219_v59 = vand.u32 2147483647, %v1203_v10  ;;  %v1221_v11 = vand.u32 2147483647, %v1205_v20 }
 0x23a   : > { %v1253_v20 = vmul.f32 4.5, %v1221_v11 }
 0x23b   : > { %1670 = vset.pattern.permute.xlu2 %v2531_v61 }
 0x23c   : > { %746 = vperm.xlu2 %1670, %v729_v22  }
 0x23d   : > { %v1926_v24 = vpop.trf.xlu1 }
 0x23e   : > { %v1206_v25 = vsub.f32 %v1926_v24, %v1924_v23  ;;  %vm2527_vm6 = vcmp.gt.f32.partialorder %v1926_v24, 0.5  ;;  %v1573_v13 = vceil.f32 %v1926_v24  ;;  %v1574_v14 = vfloor.f32 %v1926_v24 }
 0x23f   : > { %v734_v34 = vsel %vm2527_vm6, 1, %v2534_v5  ;;  %vm1572_vm14 = vcmp.lt.s32.totalorder %v1926_v24, 0  ;;  %vm1237_vm6 = vcmp.le.f32.partialorder %v1221_v11, 0.11111111 }
 0x240   : > { %827 = vrot.lane.b32.xlu0 %v730_v4, %s1754_s13  ;;  %v1571_v4 = vcvt.f32.s32 %v1570_v60 }
 0x244   : > { %752 = vperm.xlu2 %1670, %v731_v26  }
 0x245   : > { %v1939_v28 = vpop.trf.xlu1 }
 0x246   : > { %v1578_v6 = vceil.f32 %v1939_v28  ;;  %v1579_v29 = vfloor.f32 %v1939_v28  ;;  %v1207_v30 = vsub.f32 %v1939_v28, %v1936_v27  ;;  %vm1577_vm5 = vcmp.lt.s32.totalorder %v1939_v28, 0 }
 0x247   : > { %vm2526_vm7 = vcmp.gt.f32.partialorder %v1939_v28, 0.5 }
 0x248   : > { %831 = vrot.lane.b32.xlu0 %v732_v31, %s1754_s13  ;;  %v1580_v32 = vsel %vm1577_vm5, %v1578_v6, %v1579_v29  ;;  %v735_v37 = vsel %vm2526_vm7, 1, %v2534_v5 }
 0x249   : > { %v1581_v33 = vcvt.f32.s32 %v1580_v32  ;;  %v2019_v32 = vld [vmem:[%s1870_s12 + $0x58] sm:$0xff] }
 0x24b   : > { %684 = vperm.xlu1 %1669, %v1581_v33  }
 0x24c   : > { %755 = vperm.xlu2 %1670, %v732_v31  }
 0x24d   : > { %v1958_v35 = vpop.trf.xlu1 }
 0x24e   : > { %v1208_v38 = vsub.f32 %v1958_v35, %v1961_v36  ;;  %vm2525_vm13 = vcmp.gt.f32.partialorder %v1958_v35, 0.5  ;;  %v1583_v40 = vceil.f32 %v1958_v35  ;;  %v1584_v41 = vfloor.f32 %v1958_v35 }
 0x24f   : > { %vm1582_vm8 = vcmp.lt.s32.totalorder %v1958_v35, 0 }
 0x250   : > { %835 = vrot.lane.b32.xlu0 %v734_v34, %s1754_s13  ;;  %v1585_v51 = vsel %vm1582_vm8, %v1583_v40, %v1584_v41  ;;  %vm1233_vm8 = vcmp.le.f32.partialorder %v1217_v50, 0.11111111 }
 0x253   : > { %1684 = vset.pattern.permute.xlu1 %v2531_v61 }
 0x254   : > { %825 = vrot.lane.b32.xlu2 %v729_v22, %s1754_s13 }
 0x255   : > { %v1972_v43 = vpop.trf.xlu1 }
 0x256   : > { %vm2523_vm0 = vcmp.gt.f32.partialorder %v1972_v43, 0.5  ;;  %v1588_v33 = vceil.f32 %v1972_v43  ;;  %vm1587_vm5 = vcmp.lt.s32.totalorder %v1972_v43, 0 }
 0x257   : > { %v737_v29 = vsel %vm2523_vm0, 1, %v2534_v5 }
 0x258   : > { %764 = vperm.xlu0 %1671, %v735_v37  }
 0x25c   : > { %829 = vrot.lane.b32.xlu2 %v731_v26, %s1754_s13  ;;  %v1575_v26 = vsel %vm1572_vm14, %v1573_v13, %v1574_v14  ;;  %v2066_v14 = vld [vmem:[%s1870_s12 + $0x68] sm:$0xff] }
 0x25d   : > { %v1988_v54 = vpop.trf.xlu1  ;;  %v1576_v6 = vcvt.f32.s32 %v1575_v26  ;;  %v1523_v26 = vadd.f32 -0.055555556, %v1217_v50 }
 0x25e   : > { %vm2524_vm11 = vcmp.gt.f32.partialorder %v1988_v54, 0.5 }
 0x25f   : > { %v738_v63 = vsel %vm2524_vm11, 1, %v2534_v5  ;;  %vm1592_vm11 = vcmp.lt.s32.totalorder %v1988_v54, 0 }
 0x260   : > { %1672 = vset.pattern.permute.xlu0 %v2537_v2 }
 0x261   : > { %666 = vperm.xlu0 %1672, %v1551_v46   ;;  %v1218_v46 = vand.u32 2147483647, %v1202_v3  ;;  %v1586_v3 = vcvt.f32.s32 %v1585_v51  ;;  %v1220_v51 = vand.u32 2147483647, %v1204_v15 }
 0x263   : > { %v1250_v0 = vmul.f32 4.5, %v1218_v46  ;;  %v1524_v60 = vadd.f32 -0.055555556, %v1218_v46  ;;  %vm1234_vm14 = vcmp.le.f32.partialorder %v1218_v46, 0.11111111 }
 0x264   : > { %833 = vrot.lane.b32.xlu2 %v733_v21, %s1754_s13  ;;  %v736_v21 = vsel %vm2525_vm13, 1, %v2534_v5 }
 0x265   : > { %v2001_v16 = vpop.trf.xlu1  ;;  %v1266_v53 = vmul.f32 %v1250_v0, %v1218_v46 }
 0x266   : > { %vm2533_vm9 = vcmp.gt.f32.partialorder %v2001_v16, 0.5  ;;  %vm1597_vm13 = vcmp.lt.s32.totalorder %v2001_v16, 0 }
 0x269   : > { %669 = vperm.xlu0 %1672, %v1556_v9  }
 0x26c   : > { %837 = vrot.lane.b32.xlu2 %v735_v37, %s1754_s13 }
 0x26d   : > { %v2016_v31 = vpop.trf.xlu1 }
 0x271   : > { %672 = vperm.xlu0 %1672, %v1561_v56   ;;  %v2049_v56 = vld [vmem:[%s1870_s12 + $0x60] sm:$0xff] }
 0x274   : > { %761 = vperm.xlu2 %1670, %v734_v34   ;;  %v1589_v34 = vfloor.f32 %v1972_v43 }
 0x275   : > { %v2041_v9 = vpop.trf.xlu1 }
 0x276   : > { %v1590_v39 = vsel %vm1587_vm5, %v1588_v33, %v1589_v34  ;;  %vm1329_vm5 = vcmask 31744   ;;  %v1251_v34 = vmul.f32 4.5, %v1219_v59 }
 0x277   : > { %v1591_v49 = vcvt.f32.s32 %v1590_v39 }
 0x278   : > { %v1267_v0 = vmul.f32 %v1251_v34, %v1219_v59 }
 0x279   : > { %678 = vperm.xlu0 %1672, %v1571_v4   ;;  %v1265_v4 = vmul.f32 %v1249_v48, %v1217_v50  ;;  %v602_v50 = vld [vmem:[%s2079_s16 + $0x18] sm:$0xff]  ;;  %v2098_v48 = vld [vmem:[%s1870_s12 + $0x70] sm:$0xff] }
 0x27b   : > { %v1297_v33 = vsel %vm1233_vm8, %v1265_v4, %v1523_v26  ;;  %vm1235_vm8 = vcmp.le.f32.partialorder %v1219_v59, 0.11111111  ;;  %v1593_v26 = vceil.f32 %v1988_v54 }
 0x27c   : > { %767 = vperm.xlu2 %1670, %v736_v21  }
 0x27d   : > { %v2062_v13 = vpop.trf.xlu1 }
 0x281   : > { %681 = vperm.xlu0 %1672, %v1576_v6  }
 0x284   : > { %841 = vrot.lane.b32.xlu2 %v737_v29, %s1754_s13 }
 0x285   : > { %1674 = vset.pattern.permute.xlu2 %v2537_v2 }
 0x289   : > { %839 = vrot.lane.b32.xlu0 %v736_v21, %s1754_s13  ;;  %v1298_v21 = vsel %vm1234_vm14, %v1266_v53, %v1524_v60  ;;  %v1525_v53 = vadd.f32 -0.055555556, %v1219_v59  ;;  %v618_v60 = vmax.f32 %v602_v50, 0.0005 }
 0x28b   : > { %v1299_v15 = vsel %vm1235_vm8, %v1267_v0, %v1525_v53  ;;  %v2120_v0 = vld [vmem:[%s1870_s12 + $0x78] sm:$0xff]  ;;  %v1598_v53 = vceil.f32 %v2001_v16  ;;  %vm1236_vm8 = vcmp.le.f32.partialorder %v1220_v51, 0.11111111 }
 0x28c   : > { %690 = vperm.xlu2 %1674, %v1591_v49   ;;  %v739_v49 = vsel %vm2533_vm9, 1, %v2534_v5 }
 0x28d   : > { %v2043_v52 = vpop.permute.xlu2 %675 }
 0x28e   : > { %vm716_vm10 = vcmp.eq.s32.totalorder %v2036_v47, %v2043_v52 }
 0x291   : > { %687 = vperm.xlu0 %1672, %v1586_v3   ;;  %v2095_v3 = vpop.trf.xlu1 }
 0x292   : > { %v2051_v42 = vpop.permute.xlu0 %749 }
 0x293   : > { %vm794_vm12 = vcmp.eq.s32.totalorder %v2051_v42, 1 }
 0x294   : > { %1675 = vset.pattern.permute.xlu2 %v2531_v61  ;;  %v1314_v7 = vsel %vm794_vm12, %v1298_v21, 0.0  ;;  %v1252_v21 = vmul.f32 4.5, %v1220_v51 }
 0x295   : > { %773 = vperm.xlu2 %1675, %v738_v63   ;;  %v1331_v40 = vsel %vm1329_vm5, %v1314_v7, 0.0  ;;  %v1594_v7 = vfloor.f32 %v1988_v54 }
 0x296   : > { %v2072_v10 = vpop.permute.xlu2 %746  ;;  %v1268_v18 = vmul.f32 %v1252_v21, %v1220_v51 }
 0x297   : > { %vm793_vm14 = vcmp.eq.s32.totalorder %v2072_v10, 1  ;;  %v2545_v10 = vmov 5  }
 0x298   : > { %v1313_v39 = vsel %vm793_vm14, %v1297_v33, 0.0 }
 0x299   : > { %v1330_v41 = vsel %vm1329_vm5, %v1313_v39, 0.0  ;;  %1673 = vset.pattern.permute.xlu0 %v2531_v61  ;;  %v634_v39 = vmin.f32 %v618_v60, 0.9995  ;;  %v2117_v50 = vpop.trf.xlu1 }
 0x29a   : > { %v1332_v46 = vadd.f32 %v1331_v40, %v1330_v41  ;;  %770 = vperm.xlu0 %1673, %v737_v29   ;;  %v1526_v40 = vadd.f32 -0.055555556, %v1220_v51  ;;  %v1595_v41 = vsel %vm1592_vm11, %v1593_v26, %v1594_v7  ;;  %v1269_v26 = vmul.f32 %v1253_v20, %v1221_v11 }
 0x29b   : > { %v908_v60 = vsub.f32 1.0, %v634_v39  ;;  %v1527_v7 = vadd.f32 -0.055555556, %v1221_v11  ;;  %vm598_vm1 = vcmp.gt.f32.partialorder %v2117_v50, 0.5 }
 0x29c   : > { %v1300_v21 = vsel %vm1236_vm8, %v1268_v18, %v1526_v40  ;;  %v2539_v18 = vmov 0.75  }
 0x29d   : > { %845 = vrot.lane.b32.xlu2 %v739_v49, %s1754_s13  ;;  %v1301_v52 = vsel %vm1237_vm6, %v1269_v26, %v1527_v7  ;;  %vm1602_vm6 = vcmp.lt.s32.totalorder %v2016_v31, 0 }
 0x29e   : > { %v2103_v4 = vpop.permute.xlu2 %752 }
 0x29f   : > { %vm795_vm0 = vcmp.eq.s32.totalorder %v2103_v4, 1  ;;  %v604_v4 = vld [vmem:[%s2079_s16 + $0x28] sm:$0xff] }
 0x2a0   : > { %v1315_v33 = vsel %vm795_vm0, %v1299_v15, 0.0  ;;  %v1599_v15 = vfloor.f32 %v2001_v16 }
 0x2a1   : > { %v1333_v34 = vsel %vm1329_vm5, %v1315_v33, 0.0 }
 0x2a2   : > { %v1334_v59 = vadd.f32 %v1333_v34, %v1332_v46  ;;  %843 = vrot.lane.b32.xlu0 %v738_v63, %s1754_s13  ;;  %v1596_v34 = vcvt.f32.s32 %v1595_v41  ;;  %v1600_v46 = vsel %vm1597_vm13, %v1598_v53, %v1599_v15  ;;  %v1603_v41 = vceil.f32 %v2016_v31 }
 0x2a3   : > { %1676 = vset.pattern.permute.xlu0 %v2537_v2  ;;  %v1604_v53 = vfloor.f32 %v2016_v31  ;;  %vm2530_vm13 = vcmp.gt.f32.partialorder %v2041_v9, 0.5 }
 0x2a5   : > { %776 = vperm.xlu2 %1675, %v739_v49  }
 0x2a6   : > { %v756_v63 = vpop.permute.xlu2 %755 }
 0x2a7   : > { %vm796_vm7 = vcmp.eq.s32.totalorder %v756_v63, 1 }
 0x2a8   : > { %vm812_vm11 = vmand %vm796_vm7, %vm716_vm10  ;;  %v1316_v33 = vsel %vm796_vm7, %v1300_v21, 0.0  ;;  %vm2529_vm7 = vcmp.gt.f32.partialorder %v2016_v31, 0.5  ;;  %vm2528_vm10 = vcmp.gt.f32.partialorder %v2062_v13, 0.5 }
 0x2a9   : > { %v924_v49 = vsel %vm812_vm11, %v908_v60, %v634_v39  ;;  %v940_v29 = vsel %vm812_vm11, %v634_v39, %v908_v60  ;;  %v1335_v6 = vsel %vm1329_vm5, %v1316_v33, 0.0  ;;  %v892_v20 = vsel %vm812_vm11, 0.25, %v2539_v18 }
 0x2aa   : > { %1691 = vlog2.f32 %v940_v29  ;;  %v1004_v51 = vmul.f32 %v924_v49, %v924_v49  ;;  %v1336_v58 = vadd.f32 %v1335_v6, %v1334_v59  ;;  %v2131_v37 = vpop.permute.xlu0 %758  ;;  %693 = vperm.xlu0 %1676, %v1596_v34   ;;  %v1601_v39 = vcvt.f32.s32 %v1600_v46 }
 0x2ab   : > { %vm797_vm8 = vcmp.eq.s32.totalorder %v2131_v37, 1  ;;  %v740_v15 = vsel %vm2529_vm7, 1, %v2534_v5  ;;  %v741_v49 = vsel %vm2530_vm13, 1, %v2534_v5  ;;  %vm1612_vm11 = vcmp.lt.s32.totalorder %v2062_v13, 0 }
 0x2ac   : > { %v1020_v40 = vmul.f32 %v1004_v51, %v892_v20  ;;  %v1317_v11 = vsel %vm797_vm8, %v1301_v52, 0.0  ;;  %v605_v20 = vld [vmem:[%s2079_s16 + $0x30] sm:$0xff]  ;;  %v1223_v52 = vand.u32 2147483647, %v1207_v30 }
 0x2ad   : > { %v1337_v29 = vsel %vm1329_vm5, %v1317_v11, 0.0  ;;  %1677 = vset.pattern.permute.xlu2 %v2537_v2  ;;  %v1614_v11 = vfloor.f32 %v2062_v13 }
 0x2ae   : > { %v2140_v6 = vadd.f32 %v1337_v29, %v1336_v58  ;;  %696 = vperm.xlu2 %1677, %v1601_v39   ;;  %v2142_v59 = vpop.permute.xlu2 %825  ;;  %v1605_v58 = vsel %vm1602_vm6, %v1603_v41, %v1604_v53  ;;  %v2177_v39 = vsel %vm2528_vm10, 1, %v2534_v5  ;;  %v1222_v29 = vand.u32 2147483647, %v1206_v25 }
 0x2af   : > { %v1606_v33 = vcvt.f32.s32 %v1605_v58  ;;  %v621_v41 = vmax.f32 %v605_v20, 0.0005  ;;  %v1255_v30 = vmul.f32 4.5, %v1223_v52  ;;  %v1609_v58 = vfloor.f32 %v2041_v9 }
 0x2b0   : > { %v1692_v60 = vpop.eup %1691  ;;  %v1529_v20 = vadd.f32 -0.055555556, %v1223_v52  ;;  %vm1607_vm6 = vcmp.lt.s32.totalorder %v2041_v9, 0  ;;  %vm1239_vm10 = vcmp.le.f32.partialorder %v1223_v52, 0.11111111 }
 0x2b1   : > { %v960_v46 = vmul.f32 0.6931472, %v1692_v60  ;;  %v637_v60 = vmin.f32 %v621_v41, 0.9995  ;;  %v1528_v57 = vadd.f32 -0.055555556, %v1222_v29 }
 0x2b2   : > { %v2150_v63 = vpop.permute.xlu0 %827  ;;  %847 = vrot.lane.b32.xlu0 %v740_v15, %s1754_s13  ;;  %vm1238_vm7 = vcmp.le.f32.partialorder %v1222_v29, 0.11111111 }
 0x2b3   : > { %v988_v21 = vsub.f32 0.0, %v960_v46  ;;  %v1608_v46 = vceil.f32 %v2041_v9 }
 0x2b5   : > { %v2153_v26 = vmul.f32 %v1020_v40, %v988_v21  ;;  %v1613_v40 = vceil.f32 %v2062_v13 }
 0x2b6   : > { %1678 = vset.pattern.permute.xlu2 %v2531_v61  ;;  %v2156_v7 = vpop.permute.xlu2 %829 }
 0x2b7   : > { %2541 = vst [vmem:[#allocation3_spill] sm:$0xff] %v2153_v26  ;;  %779 = vperm.xlu2 %1678, %v740_v15   ;;  %v1615_v53 = vsel %vm1612_vm11, %v1613_v40, %v1614_v11  ;;  %v1254_v15 = vmul.f32 4.5, %v1222_v29  ;;  %v1224_v40 = vand.u32 2147483647, %v1208_v38  ;;  %v911_v11 = vsub.f32 1.0, %v637_v60 }
 0x2b8   : > { %v1616_v23 = vcvt.f32.s32 %v1615_v53  ;;  %v1610_v53 = vsel %vm1607_vm6, %v1608_v46, %v1609_v58  ;;  %v2544_v26 = vmov 0.75  }
 0x2b9   : > { %v1270_v22 = vmul.f32 %v1254_v15, %v1222_v29  ;;  %v1611_v36 = vcvt.f32.s32 %v1610_v53  ;;  %v1256_v38 = vmul.f32 4.5, %v1224_v40  ;;  %v1530_v53 = vadd.f32 -0.055555556, %v1224_v40 }
 0x2ba   : > { %v2159_v34 = vpop.permute.xlu0 %831  ;;  %699 = vperm.xlu0 %1676, %v1606_v33   ;;  %v1271_v33 = vmul.f32 %v1255_v30, %v1223_v52 }
 0x2bb   : > { %v1302_v5 = vsel %vm1238_vm7, %v1270_v22, %v1528_v57  ;;  %v2542_v57 = vmov 4   ;;  %v2543_v22 = vmov 0  }
 0x2bc   : > { %v1303_v30 = vsel %vm1239_vm10, %v1271_v33, %v1529_v20 }
 0x2bd   : > { %v685_v25 = vpop.permute.xlu1 %684 }
 0x2be   : > { %v2165_v51 = vpop.permute.xlu2 %833  ;;  %vm719_vm11 = vcmp.eq.s32.totalorder %v2036_v47, %v685_v25  ;;  %v1623_v25 = vceil.f32 %v2117_v50 }
 0x2bf   : > { %849 = vrot.lane.b32.xlu2 %v741_v49, %s1754_s13 }
 0x2c2   : > { %v2183_v27 = vpop.permute.xlu0 %835  ;;  %851 = vrot.lane.b32.xlu0 %v2177_v39, %s1754_s13 }
 0x2c6   : > { %v2189_v21 = vpop.permute.xlu2 %837 }
 0x2c7   : > { %782 = vperm.xlu2 %1678, %v741_v49   ;;  %v615_v49 = vmax.f32 %v599_v45, 0.0005  ;;  %v1624_v45 = vfloor.f32 %v2117_v50 }
 0x2c9   : > { %v631_v46 = vmin.f32 %v615_v49, 0.9995 }
 0x2ca   : > { %v765_v41 = vpop.permute.xlu0 %764  ;;  %705 = vperm.xlu0 %1676, %v1616_v23   ;;  %v600_v23 = vld [vmem:[%s2079_s16 + $0x8] sm:$0xff] }
 0x2cb   : > { %vm799_vm13 = vcmp.eq.s32.totalorder %v765_v41, 1  ;;  %v1272_v41 = vmul.f32 %v1256_v38, %v1224_v40 }
 0x2cc   : > { %v1319_v61 = vsel %vm799_vm13, %v1303_v30, 0.0  ;;  %vm815_vm9 = vmand %vm799_vm13, %vm719_vm11  ;;  %vm1622_vm13 = vcmp.lt.s32.totalorder %v2117_v50, 0  ;;  %v905_v30 = vsub.f32 1.0, %v631_v46 }
 0x2cd   : > { %v927_v52 = vsel %vm815_vm9, %v911_v11, %v637_v60  ;;  %v943_v15 = vsel %vm815_vm9, %v637_v60, %v911_v11  ;;  %v895_v58 = vsel %vm815_vm9, 0.25, %v2539_v18  ;;  %v2208_v60 = vsel %vm598_vm1, 1, %v2543_v22 }
 0x2ce   : > { %1693 = vlog2.f32 %v943_v15  ;;  %v1007_v29 = vmul.f32 %v927_v52, %v927_v52  ;;  %v2199_v2 = vpop.permute.xlu2 %761  ;;  %vm1240_vm9 = vcmp.le.f32.partialorder %v1224_v40, 0.11111111  ;;  %v616_v52 = vmax.f32 %v600_v23, 0.0005 }
 0x2cf   : > { %vm798_vm7 = vcmp.eq.s32.totalorder %v2199_v2, 1  ;;  %1679 = vset.pattern.permute.xlu2 %v2542_v57  ;;  %v1341_v15 = vsel %vm1329_vm5, %v1319_v61, 0.0 }
 0x2d0   : > { %v1023_v33 = vmul.f32 %v1007_v29, %v895_v58  ;;  %v1318_v20 = vsel %vm798_vm7, %v1302_v5, 0.0  ;;  %702 = vperm.xlu2 %1679, %v1611_v36   ;;  %v1625_v5 = vsel %vm1622_vm13, %v1623_v25, %v1624_v45  ;;  %v632_v23 = vmin.f32 %v616_v52, 0.9995  ;;  %v601_v25 = vld [vmem:[%s2079_s16 + $0x10] sm:$0xff] }
 0x2d1   : > { %v1339_v11 = vsel %vm1329_vm5, %v1318_v20, 0.0  ;;  %v1626_v40 = vcvt.f32.s32 %v1625_v5 }
 0x2d2   : > { %v1340_v49 = vadd.f32 %v1339_v11, %v2140_v6  ;;  %855 = vrot.lane.b32.xlu0 %v2208_v60, %s1754_s13  ;;  %v1304_v6 = vsel %vm1240_vm9, %v1272_v41, %v1530_v53  ;;  %v906_v52 = vsub.f32 1.0, %v632_v23 }
 0x2d3   : > { %v667_v29 = vpop.permute.xlu0 %666 }
 0x2d4   : > { %v1694_v36 = vpop.eup %1693  ;;  %vm713_vm10 = vcmp.eq.s32.totalorder %v2036_v47, %v667_v29  ;;  %v1342_v58 = vadd.f32 %v1341_v15, %v1340_v49  ;;  %v617_v15 = vmax.f32 %v601_v25, 0.0005 }
 0x2d5   : > { %v966_v20 = vmul.f32 0.6931472, %v1694_v36  ;;  %vm809_vm6 = vmand %vm793_vm14, %vm713_vm10  ;;  %vm858_vm14 = vcmp.ne.s32.totalorder %v2150_v63, 0  ;;  %vm597_vm10 = vcmp.gt.f32.partialorder %v2095_v3, 0.5  ;;  %v603_v63 = vld [vmem:[%s2079_s16 + $0x20] sm:$0xff] }
 0x2d6   : > { %v921_v38 = vsel %vm809_vm6, %v905_v30, %v631_v46  ;;  %v937_v11 = vsel %vm809_vm6, %v631_v46, %v905_v30  ;;  %v2222_v18 = vpop.permute.xlu2 %767  ;;  %v889_v29 = vsel %vm809_vm6, 0.25, %v2544_v26  ;;  %vm874_vm6 = vmor %vm584_vm15, %vm858_vm14  ;;  %v743_v42 = vsel %vm597_vm10, 1, %v2543_v22 }
 0x2d7   : > { %1695 = vlog2.f32 %v937_v11  ;;  %v1001_v61 = vmul.f32 %v921_v38, %v921_v38  ;;  %vm800_vm11 = vcmp.eq.s32.totalorder %v2222_v18, 1  ;;  %v991_v45 = vsub.f32 0.0, %v966_v20 }
 0x2d8   : > { %v1320_v49 = vsel %vm800_vm11, %v1304_v6, 0.0  ;;  %1680 = vset.pattern.permute.xlu2 %v2545_v10  ;;  %v633_v6 = vmin.f32 %v617_v15, 0.9995  ;;  %v1050_v25 = vsel %vm874_vm6, 1, %v2543_v22  ;;  %v619_v1 = vmax.f32 %v603_v63, 0.0005 }
 0x2d9   : > { %v1017_v41 = vmul.f32 %v1001_v61, %v889_v29  ;;  %v1343_v46 = vsel %vm1329_vm5, %v1320_v49, 0.0  ;;  %785 = vperm.xlu2 %1680, %v2177_v39   ;;  %v2232_v53 = vmul.f32 %v1023_v33, %v991_v45  ;;  %v2546_v29 = vsub.f32 %v1988_v54, %v1991_v55 }
 0x2da   : > { %v2234_v30 = vadd.f32 %v1343_v46, %v1342_v58  ;;  %711 = vperm.xlu0 %1676, %v1626_v40   ;;  %vm859_vm15 = vcmp.ne.s32.totalorder %v2156_v7, 0  ;;  %v635_v7 = vmin.f32 %v619_v1, 0.9995  ;;  %v1619_v63 = vfloor.f32 %v2095_v3 }
 0x2db   : > { %v670_v5 = vpop.permute.xlu0 %669  ;;  %v1226_v49 = vand.u32 2147483647, %v2546_v29 }
 0x2dc   : > { %vm714_vm13 = vcmp.eq.s32.totalorder %v2036_v47, %v670_v5 }
 0x2dd   : > { %v1696_v36 = vpop.eup %1695  ;;  %vm810_vm9 = vmand %vm794_vm12, %vm714_vm13 }
 0x2de   : > { %v954_v39 = vmul.f32 0.6931472, %v1696_v36  ;;  %v922_v33 = vsel %vm810_vm9, %v906_v52, %v632_v23  ;;  %v938_v20 = vsel %vm810_vm9, %v632_v23, %v906_v52  ;;  %v2241_v58 = vpop.permute.xlu2 %841  ;;  %v890_v11 = vsel %vm810_vm9, 0.25, %v2544_v26  ;;  %vm2264_vm13 = vmor %vm585_vm3, %vm859_vm15 }
 0x2df   : > { %1697 = vlog2.f32 %v938_v20  ;;  %v1002_v38 = vmul.f32 %v922_v33, %v922_v33  ;;  %v907_v23 = vsub.f32 1.0, %v633_v6  ;;  %v1258_v33 = vmul.f32 4.5, %v1226_v49 }
 0x2e0   : > { %v985_v40 = vsub.f32 0.0, %v954_v39  ;;  %vm1617_vm3 = vcmp.lt.s32.totalorder %v2095_v3, 0  ;;  %vm1242_vm15 = vcmp.le.f32.partialorder %v1226_v49, 0.11111111 }
 0x2e1   : > { %v1018_v61 = vmul.f32 %v1002_v38, %v890_v11  ;;  %853 = vrot.lane.b32.xlu2 %v743_v42, %s1754_s13  ;;  %v1618_v38 = vceil.f32 %v2095_v3  ;;  %v1274_v29 = vmul.f32 %v1258_v33, %v1226_v49 }
 0x2e2   : > { %1683 = vset.pattern.permute.xlu0 %v2545_v10  ;;  %v2253_v45 = vmul.f32 %v1017_v41, %v985_v40  ;;  %v909_v40 = vsub.f32 1.0, %v635_v7 }
 0x2e3   : > { %v673_v46 = vpop.permute.xlu0 %672  ;;  %1069 = vperm.xlu0 %1683, %v1050_v25  }
 0x2e4   : > { %vm715_vm12 = vcmp.eq.s32.totalorder %v2036_v47, %v673_v46  ;;  %v1532_v46 = vadd.f32 -0.055555556, %v1226_v49 }
 0x2e5   : > { %v1698_v52 = vpop.eup %1697  ;;  %vm811_vm14 = vmand %vm795_vm0, %vm715_vm12  ;;  %vm860_vm0 = vcmp.ne.s32.totalorder %v2159_v34, 0 }
 0x2e6   : > { %v956_v15 = vmul.f32 0.6931472, %v1698_v52  ;;  %v923_v55 = vsel %vm811_vm14, %v907_v23, %v633_v6  ;;  %v939_v5 = vsel %vm811_vm14, %v633_v6, %v907_v23  ;;  %v2268_v36 = vpop.permute.xlu2 %690  ;;  %v891_v20 = vsel %vm811_vm14, 0.25, %v2544_v26  ;;  %vm876_vm14 = vmor %vm586_vm4, %vm860_vm0 }
 0x2e7   : > { %1699 = vlog2.f32 %v939_v5  ;;  %v1003_v39 = vmul.f32 %v923_v55, %v923_v55  ;;  %vm721_vm9 = vcmp.eq.s32.totalorder %v2036_v47, %v2268_v36  ;;  %v1051_v6 = vsel %vm2264_vm13, 1, %v2543_v22 }
 0x2e8   : > { %v986_v8 = vsub.f32 0.0, %v956_v15  ;;  %v620_v23 = vmax.f32 %v604_v4, 0.0005  ;;  %v1620_v52 = vsel %vm1617_vm3, %v1618_v38, %v1619_v63  ;;  %v1306_v34 = vsel %vm1242_vm15, %v1274_v29, %v1532_v46 }
 0x2e9   : > { %v1019_v11 = vmul.f32 %v1003_v39, %v891_v20  ;;  %788 = vperm.xlu2 %1680, %v743_v42   ;;  %v1621_v49 = vcvt.f32.s32 %v1620_v52  ;;  %vm857_vm4 = vcmp.ne.s32.totalorder %v2142_v59, 0  ;;  %v2549_v63 = vsub.f32 %v2001_v16, %v2004_v17 }
 0x2ea   : > { %v2280_v25 = vmul.f32 %v1018_v61, %v986_v8  ;;  %v636_v5 = vmin.f32 %v620_v23, 0.9995  ;;  %vm2552_vm15 = vcmp.gt.f32.partialorder %v1910_v19, 0.5 }
 0x2eb   : > { %v679_v1 = vpop.permute.xlu0 %678  ;;  %1072 = vperm.xlu0 %1683, %v1051_v6   ;;  %v1227_v6 = vand.u32 2147483647, %v2549_v63 }
 0x2ec   : > { %vm717_vm6 = vcmp.eq.s32.totalorder %v2036_v47, %v679_v1  ;;  %v910_v12 = vsub.f32 1.0, %v636_v5  ;;  %v606_v1 = vld [vmem:[%s2079_s16 + $0x38] sm:$0xff] }
 0x2ed   : > { %v1700_v42 = vpop.eup %1699  ;;  %vm813_vm12 = vmand %vm797_vm8, %vm717_vm6  ;;  %vm861_vm8 = vcmp.ne.s32.totalorder %v2165_v51, 0  ;;  %v1259_v2 = vmul.f32 4.5, %v1227_v6 }
 0x2ee   : > { %v958_v41 = vmul.f32 0.6931472, %v1700_v42  ;;  %v925_v15 = vsel %vm813_vm12, %v909_v40, %v635_v7  ;;  %v941_v55 = vsel %vm813_vm12, %v635_v7, %v909_v40  ;;  %v893_v33 = vsel %vm813_vm12, 0.25, %v2544_v26  ;;  %vm2310_vm6 = vmor %vm583_vm2, %vm857_vm4 }
 0x2ef   : > { %1701 = vlog2.f32 %v941_v55  ;;  %v1005_v61 = vmul.f32 %v925_v15, %v925_v15  ;;  %v2288_v39 = vpop.permute.xlu2 %773  ;;  %v1052_v7 = vsel %vm876_vm14, 1, %v2543_v22  ;;  %vm877_vm12 = vmor %vm2552_vm15, %vm861_vm8  ;;  %vm2553_vm2 = vcmp.gt.f32.partialorder %v2001_v16, 0.5 }
 0x2f0   : > { %vm802_vm13 = vcmp.eq.s32.totalorder %v2288_v39, 1  ;;  %v987_v37 = vsub.f32 0.0, %v958_v41  ;;  %v1049_v42 = vsel %vm2310_vm6, 1, %v2543_v22  ;;  %v1053_v19 = vsel %vm877_vm12, 1, %v2543_v22 }
 0x2f1   : > { %v1021_v4 = vmul.f32 %v1005_v61, %v893_v33  ;;  %v2294_v20 = vsel %vm802_vm13, %v1306_v34, 0.0  ;;  %1681 = vset.pattern.permute.xlu2 %v2542_v57  ;;  %v622_v41 = vmax.f32 %v606_v1, 0.0005  ;;  %vm862_vm4 = vcmp.ne.s32.totalorder %v2183_v27, 0  ;;  %v609_v61 = vld [vmem:[%s2079_s16 + $0x50] sm:$0xff]  ;;  %v607_v27 = vld [vmem:[%s2079_s16 + $0x40] sm:$0xff] }
 0x2f2   : > { %708 = vperm.xlu2 %1681, %v1621_v49   ;;  %v2298_v8 = vmul.f32 %v1019_v11, %v987_v37  ;;  %v1275_v16 = vmul.f32 %v1259_v2, %v1227_v6  ;;  %vm1243_vm8 = vcmp.le.f32.partialorder %v1227_v6, 0.11111111  ;;  %v625_v37 = vmax.f32 %v609_v61, 0.0005 }
 0x2f3   : > { %v682_v38 = vpop.permute.xlu0 %681  ;;  %1075 = vperm.xlu0 %1683, %v1052_v7   ;;  %v638_v33 = vmin.f32 %v622_v41, 0.9995  ;;  %vm863_vm15 = vcmp.ne.s32.totalorder %v2189_v21, 0 }
 0x2f4   : > { %vm718_vm3 = vcmp.eq.s32.totalorder %v2036_v47, %v682_v38 }
 0x2f5   : > { %v1702_v57 = vpop.eup %1701  ;;  %vm814_vm0 = vmand %vm798_vm7, %vm718_vm3  ;;  %vm2554_vm3 = vcmp.gt.f32.partialorder %v1926_v24, 0.5 }
 0x2f6   : > { %v962_v59 = vmul.f32 0.6931472, %v1702_v57  ;;  %v926_v40 = vsel %vm814_vm0, %v910_v12, %v636_v5  ;;  %v942_v23 = vsel %vm814_vm0, %v636_v5, %v910_v12  ;;  %v894_v29 = vsel %vm814_vm0, 0.25, %v2544_v26  ;;  %vm878_vm0 = vmor %vm2554_vm3, %vm862_vm4 }
 0x2f7   : > { %1703 = vlog2.f32 %v942_v23  ;;  %v1006_v17 = vmul.f32 %v926_v40, %v926_v40  ;;  %v846_v51 = vpop.permute.xlu2 %845  ;;  %v1533_v5 = vadd.f32 -0.055555556, %v1227_v6  ;;  %v912_v57 = vsub.f32 1.0, %v638_v33 }
 0x2f8   : > { %vm867_vm14 = vcmp.ne.s32.totalorder %v846_v51, 0  ;;  %v989_v46 = vsub.f32 0.0, %v962_v59  ;;  %v1054_v6 = vsel %vm878_vm0, 1, %v2543_v22  ;;  %v641_v59 = vmin.f32 %v625_v37, 0.9995 }
 0x2f9   : > { %v1022_v62 = vmul.f32 %v1006_v17, %v894_v29  ;;  %vm883_vm7 = vmor %vm2553_vm2, %vm867_vm14  ;;  %v1307_v7 = vsel %vm1243_vm8, %v1275_v16, %v1533_v5  ;;  %v623_v40 = vmax.f32 %v607_v27, 0.0005  ;;  %v2556_v23 = vsub.f32 %v2016_v31, %v2019_v32 }
 0x2fa   : > { %1682 = vset.pattern.permute.xlu2 %v2545_v10  ;;  %v1059_v52 = vsel %vm883_vm7, 1, %v2543_v22  ;;  %v2326_v15 = vmul.f32 %v1021_v4, %v989_v46  ;;  %v2555_v4 = vsub.f32 %v1972_v43, %v1975_v44  ;;  %vm2557_vm2 = vcmp.gt.f32.partialorder %v1939_v28, 0.5 }
 0x2fb   : > { %v840_v55 = vpop.permute.xlu0 %839  ;;  %1066 = vperm.xlu2 %1682, %v1049_v42   ;;  %1078 = vperm.xlu0 %1683, %v1053_v19   ;;  %v1228_v17 = vand.u32 2147483647, %v2556_v23  ;;  %vm2352_vm7 = vmor %vm2557_vm2, %vm863_vm15  ;;  %v915_v29 = vsub.f32 1.0, %v641_v59  ;;  %v639_v2 = vmin.f32 %v623_v40, 0.9995  ;;  %vm2560_vm0 = vcmp.gt.f32.partialorder %v1958_v35, 0.5 }
 0x2fc   : > { %1096 = vperm.xlu1 %1684, %v1059_v52   ;;  %v1225_v12 = vand.u32 2147483647, %v2555_v4  ;;  %vm864_vm8 = vcmp.ne.s32.totalorder %v840_v55, 0  ;;  %v1055_v28 = vsel %vm2352_vm7, 1, %v2543_v22  ;;  %v1347_v40 = vsel %vm1329_vm5, %v2294_v20, 0.0 }
 0x2fd   : > { %v1704_v34 = vpop.eup %1703  ;;  %v1260_v18 = vmul.f32 4.5, %v1228_v17  ;;  %v913_v16 = vsub.f32 1.0, %v639_v2  ;;  %vm2364_vm15 = vmor %vm2560_vm0, %vm864_vm8  ;;  %v1534_v37 = vadd.f32 -0.055555556, %v1228_v17  ;;  %vm865_vm2 = vcmp.ne.s32.totalorder %v2241_v58, 0 }
 0x2fe   : > { %v964_v10 = vmul.f32 0.6931472, %v1704_v34  ;;  %v1257_v44 = vmul.f32 4.5, %v1225_v12  ;;  %v1531_v42 = vadd.f32 -0.055555556, %v1225_v12  ;;  %vm2565_vm8 = vcmp.gt.f32.partialorder %v1972_v43, 0.5 }
 0x2ff   : > { %v777_v49 = vpop.permute.xlu2 %776  ;;  %vm1241_vm4 = vcmp.le.f32.partialorder %v1225_v12, 0.11111111 }
 0x300   : > { %vm803_vm6 = vcmp.eq.s32.totalorder %v777_v49, 1  ;;  %v990_v38 = vsub.f32 0.0, %v964_v10  ;;  %v1273_v32 = vmul.f32 %v1257_v44, %v1225_v12  ;;  %v1276_v49 = vmul.f32 %v1260_v18, %v1228_v17 }
 0x301   : > { %v2337_v63 = vsel %vm803_vm6, %v1307_v7, 0.0 }
 0x302   : > { %v2340_v11 = vmul.f32 %v1022_v62, %v990_v38  ;;  %v1305_v34 = vsel %vm1241_vm4, %v1273_v32, %v1531_v42 }
 0x303   : > { %v688_v24 = vpop.permute.xlu0 %687  ;;  %791 = vperm.xlu2 %1682, %v2208_v60   ;;  %1081 = vperm.xlu0 %1683, %v1054_v6  }
 0x304   : > { %vm720_vm12 = vcmp.eq.s32.totalorder %v2036_v47, %v688_v24  ;;  %v608_v24 = vld [vmem:[%s2079_s16 + $0x48] sm:$0xff] }
 0x305   : > { %vm816_vm14 = vmand %vm800_vm11, %vm720_vm12 }
 0x306   : > { %v928_v51 = vsel %vm816_vm14, %v912_v57, %v638_v33  ;;  %v944_v1 = vsel %vm816_vm14, %v638_v33, %v912_v57  ;;  %v896_v46 = vsel %vm816_vm14, 0.25, %v2544_v26  ;;  %vm1244_vm14 = vcmp.le.f32.partialorder %v1228_v17, 0.11111111 }
 0x307   : > { %1705 = vlog2.f32 %v944_v1  ;;  %v1008_v21 = vmul.f32 %v928_v51, %v928_v51  ;;  %v1308_v36 = vsel %vm1244_vm14, %v1276_v49, %v1534_v37  ;;  %v1056_v17 = vsel %vm2364_vm15, 1, %v2543_v22  ;;  %v611_v49 = vld [vmem:[%s2079_s16 + $0x60] sm:$0xff] }
 0x308   : > { %v697_v62 = vpop.permute.xlu2 %696  ;;  %vm2566_vm15 = vcmp.gt.f32.partialorder %v2041_v9, 0.5 }
 0x309   : > { %v1024_v19 = vmul.f32 %v1008_v21, %v896_v46  ;;  %vm723_vm11 = vcmp.eq.s32.totalorder %v2036_v47, %v697_v62  ;;  %v1349_v21 = vsel %vm1329_vm5, %v2337_v63, 0.0 }
 0x30a   : > { %vm819_vm3 = vmand %vm803_vm6, %vm723_vm11  ;;  %vm2564_vm11 = vcmp.gt.f32.partialorder %v1988_v54, 0.5 }
 0x30b   : > { %v931_v52 = vsel %vm819_vm3, %v915_v29, %v641_v59  ;;  %v947_v41 = vsel %vm819_vm3, %v641_v59, %v915_v29  ;;  %1084 = vperm.xlu0 %1683, %v1055_v28   ;;  %v899_v55 = vsel %vm819_vm3, 0.25, %v2544_v26  ;;  %vm881_vm3 = vmor %vm2565_vm8, %vm865_vm2 }
 0x30c   : > { %1707 = vlog2.f32 %v947_v41  ;;  %v1011_v5 = vmul.f32 %v931_v52, %v931_v52  ;;  %v771_v61 = vpop.permute.xlu0 %770 }
 0x30d   : > { %v1706_v10 = vpop.eup %1705  ;;  %vm801_vm6 = vcmp.eq.s32.totalorder %v771_v61, 1 }
 0x30e   : > { %v968_v4 = vmul.f32 0.6931472, %v1706_v10  ;;  %v1027_v12 = vmul.f32 %v1011_v5, %v899_v55  ;;  %vm817_vm12 = vmand %vm801_vm6, %vm721_vm9  ;;  %v1321_v7 = vsel %vm801_vm6, %v1305_v34, 0.0 }
 0x30f   : > { %v929_v27 = vsel %vm817_vm12, %v913_v16, %v639_v2  ;;  %v945_v35 = vsel %vm817_vm12, %v639_v2, %v913_v16  ;;  %v1345_v38 = vsel %vm1329_vm5, %v1321_v7, 0.0  ;;  %v897_v44 = vsel %vm817_vm12, 0.25, %v2544_v26 }
 0x310   : > { %1709 = vlog2.f32 %v945_v35  ;;  %v1009_v57 = vmul.f32 %v929_v27, %v929_v27  ;;  %v1346_v6 = vadd.f32 %v1345_v38, %v2234_v30  ;;  %v992_v59 = vsub.f32 0.0, %v968_v4  ;;  %v610_v27 = vld [vmem:[%s2079_s16 + $0x58] sm:$0xff] }
 0x311   : > { %v2378_v23 = vpop.permute.xlu2 %779  ;;  %v624_v2 = vmax.f32 %v608_v24, 0.0005  ;;  %v627_v38 = vmax.f32 %v611_v49, 0.0005  ;;  %v626_v24 = vmax.f32 %v610_v27, 0.0005 }
 0x312   : > { %v1708_v51 = vpop.eup %1707  ;;  %v1025_v1 = vmul.f32 %v1009_v57, %v897_v44  ;;  %v1348_v60 = vadd.f32 %v1347_v40, %v1346_v6  ;;  %vm804_vm9 = vcmp.eq.s32.totalorder %v2378_v23, 1  ;;  %v2384_v30 = vmul.f32 %v1024_v19, %v992_v59 }
 0x313   : > { %v974_v20 = vmul.f32 0.6931472, %v1708_v51  ;;  %v1324_v29 = vsel %vm804_vm9, %v1308_v36, 0.0  ;;  %1087 = vperm.xlu0 %1683, %v1056_v17   ;;  %v2563_v19 = vsub.f32 %v2041_v9, %v2049_v56  ;;  %v640_v41 = vmin.f32 %v624_v2, 0.9995 }
 0x314   : > { %v1350_v46 = vadd.f32 %v1349_v21, %v1348_v60  ;;  %v1351_v62 = vsel %vm1329_vm5, %v1324_v29, 0.0  ;;  %v844_v32 = vpop.permute.xlu0 %843  ;;  %v1057_v56 = vsel %vm881_vm3, 1, %v2543_v22  ;;  %v643_v36 = vmin.f32 %v627_v38, 0.9995 }
 0x315   : > { %vm866_vm7 = vcmp.ne.s32.totalorder %v844_v32, 0  ;;  %v995_v42 = vsub.f32 0.0, %v974_v20  ;;  %v1229_v28 = vand.u32 2147483647, %v2563_v19  ;;  %v914_v54 = vsub.f32 1.0, %v640_v41 }
 0x316   : > { %v1710_v18 = vpop.eup %1709  ;;  %v1352_v63 = vadd.f32 %v1351_v62, %v1350_v46  ;;  %vm882_vm4 = vmor %vm2564_vm11, %vm866_vm7  ;;  %v2567_v51 = vsub.f32 %v2062_v13, %v2066_v14  ;;  %vm2568_vm11 = vcmp.gt.f32.partialorder %v2016_v31, 0.5  ;;  %v642_v20 = vmin.f32 %v626_v24, 0.9995 }
 0x317   : > { %v970_v52 = vmul.f32 0.6931472, %v1710_v18  ;;  %v1058_v58 = vsel %vm882_vm4, 1, %v2543_v22  ;;  %v2400_v16 = vmul.f32 %v1027_v12, %v995_v42  ;;  %v1261_v34 = vmul.f32 4.5, %v1229_v28 }
 0x318   : > { %1093 = vperm.xlu2 %1682, %v1058_v58   ;;  %v1535_v55 = vadd.f32 -0.055555556, %v1229_v28  ;;  %vm1245_vm2 = vcmp.le.f32.partialorder %v1229_v28, 0.11111111  ;;  %v917_v29 = vsub.f32 1.0, %v643_v36  ;;  %v916_v62 = vsub.f32 1.0, %v642_v20 }
 0x319   : > { %v850_v5 = vpop.permute.xlu2 %849  ;;  %v993_v61 = vsub.f32 0.0, %v970_v52  ;;  %v1277_v33 = vmul.f32 %v1261_v34, %v1229_v28 }
 0x31a   : > { %vm869_vm0 = vcmp.ne.s32.totalorder %v850_v5, 0 }
 0x31b   : > { %1090 = vperm.xlu0 %1683, %v1057_v56   ;;  %v2403_v10 = vmul.f32 %v1025_v1, %v993_v61  ;;  %vm885_vm6 = vmor %vm2566_vm15, %vm869_vm0  ;;  %v1309_v39 = vsel %vm1245_vm2, %v1277_v33, %v1535_v55  ;;  %v1230_v1 = vand.u32 2147483647, %v2567_v51 }
 0x31c   : > { %v694_v43 = vpop.permute.xlu0 %693  ;;  %v1061_v12 = vsel %vm885_vm6, 1, %v2543_v22 }
 0x31d   : > { %vm722_vm12 = vcmp.eq.s32.totalorder %v2036_v47, %v694_v43  ;;  %v1262_v32 = vmul.f32 4.5, %v1230_v1  ;;  %v1536_v56 = vadd.f32 -0.055555556, %v1230_v1  ;;  %vm1246_vm6 = vcmp.le.f32.partialorder %v1230_v1, 0.11111111 }
 0x31e   : > { %vm818_vm14 = vmand %vm802_vm13, %vm722_vm12 }
 0x31f   : > { %v930_v37 = vsel %vm818_vm14, %v914_v54, %v640_v41  ;;  %v946_v4 = vsel %vm818_vm14, %v640_v41, %v914_v54  ;;  %v898_v9 = vsel %vm818_vm14, 0.25, %v2544_v26  ;;  %v1278_v58 = vmul.f32 %v1262_v32, %v1230_v1  ;;  %v612_v41 = vld [vmem:[%s2079_s16 + $0x68] sm:$0xff] }
 0x320   : > { %1711 = vlog2.f32 %v946_v4  ;;  %v1010_v7 = vmul.f32 %v930_v37, %v930_v37  ;;  %1102 = vperm.xlu2 %1682, %v1061_v12   ;;  %v628_v43 = vmax.f32 %v612_v41, 0.0005  ;;  %vm2569_vm14 = vcmp.gt.f32.partialorder %v2062_v13, 0.5 }
 0x321   : > { %v783_v35 = vpop.permute.xlu2 %782  ;;  %v1310_v23 = vsel %vm1246_vm6, %v1278_v58, %v1536_v56 }
 0x322   : > { %v1026_v57 = vmul.f32 %v1010_v7, %v898_v9  ;;  %vm805_vm7 = vcmp.eq.s32.totalorder %v783_v35, 1  ;;  %v644_v27 = vmin.f32 %v628_v43, 0.9995 }
 0x323   : > { %v1325_v6 = vsel %vm805_vm7, %v1309_v39, 0.0  ;;  %v2570_v39 = vsub.f32 %v2095_v3, %v2098_v48 }
 0x324   : > { %v1353_v59 = vsel %vm1329_vm5, %v1325_v6, 0.0  ;;  %v848_v40 = vpop.permute.xlu0 %847 }
 0x325   : > { %v1354_v44 = vadd.f32 %v1353_v59, %v1352_v63  ;;  %vm868_vm13 = vcmp.ne.s32.totalorder %v848_v40, 0  ;;  %v1231_v6 = vand.u32 2147483647, %v2570_v39 }
 0x326   : > { %v1712_v17 = vpop.eup %1711  ;;  %vm884_vm4 = vmor %vm2568_vm11, %vm868_vm13 }
 0x327   : > { %v972_v60 = vmul.f32 0.6931472, %v1712_v17  ;;  %v1060_v21 = vsel %vm884_vm4, 1, %v2543_v22  ;;  %v1263_v51 = vmul.f32 4.5, %v1231_v6 }
 0x328   : > { %1099 = vperm.xlu0 %1683, %v1060_v21  }
 0x329   : > { %v994_v2 = vsub.f32 0.0, %v972_v60  ;;  %v1279_v21 = vmul.f32 %v1263_v51, %v1231_v6 }
 0x32a   : > { %v703_v46 = vpop.permute.xlu2 %702 }
 0x32b   : > { %vm725_vm8 = vcmp.eq.s32.totalorder %v2036_v47, %v703_v46  ;;  %v2423_v42 = vmul.f32 %v1026_v57, %v994_v2 }
 0x32c   : > { %vm821_vm3 = vmand %vm805_vm7, %vm725_vm8  ;;  %v700_v14 = vpop.permute.xlu0 %699  ;;  %vm1247_vm8 = vcmp.le.f32.partialorder %v1231_v6, 0.11111111 }
 0x32d   : > { %v933_v31 = vsel %vm821_vm3, %v917_v29, %v643_v36  ;;  %v949_v18 = vsel %vm821_vm3, %v643_v36, %v917_v29  ;;  %vm724_vm0 = vcmp.eq.s32.totalorder %v2036_v47, %v700_v14  ;;  %v901_v28 = vsel %vm821_vm3, 0.25, %v2544_v26  ;;  %v613_v29 = vld [vmem:[%s2079_s16 + $0x70] sm:$0xff] }
 0x32e   : > { %1713 = vlog2.f32 %v949_v18  ;;  %v1013_v19 = vmul.f32 %v933_v31, %v933_v31  ;;  %vm820_vm15 = vmand %vm804_vm9, %vm724_vm0  ;;  %v918_v36 = vsub.f32 1.0, %v644_v27 }
 0x32f   : > { %v932_v63 = vsel %vm820_vm15, %v916_v62, %v642_v20  ;;  %v948_v52 = vsel %vm820_vm15, %v642_v20, %v916_v62  ;;  %v900_v34 = vsel %vm820_vm15, 0.25, %v2544_v26  ;;  %v1537_v20 = vadd.f32 -0.055555556, %v1231_v6 }
 0x330   : > { %v1029_v5 = vmul.f32 %v1013_v19, %v901_v28  ;;  %1715 = vlog2.f32 %v948_v52  ;;  %v1012_v61 = vmul.f32 %v932_v63, %v932_v63  ;;  %v629_v62 = vmax.f32 %v613_v29, 0.0005 }
 0x331   : > { %v1311_v32 = vsel %vm1247_vm8, %v1279_v21, %v1537_v20 }
 0x332   : > { %v1028_v54 = vmul.f32 %v1012_v61, %v900_v34  ;;  %v645_v52 = vmin.f32 %v629_v62, 0.9995 }
 0x333   : > { %v786_v33 = vpop.permute.xlu2 %785 }
 0x334   : > { %v1714_v55 = vpop.eup %1713  ;;  %vm806_vm12 = vcmp.eq.s32.totalorder %v786_v33, 1  ;;  %v852_v49 = vpop.permute.xlu0 %851 }
 0x335   : > { %v978_v37 = vmul.f32 0.6931472, %v1714_v55  ;;  %v1326_v4 = vsel %vm806_vm12, %v1310_v23, 0.0  ;;  %vm870_vm9 = vcmp.ne.s32.totalorder %v852_v49, 0  ;;  %v614_v55 = vld [vmem:[%s2079_s16 + $0x78] sm:$0xff]  ;;  %v2571_v23 = vsub.f32 %v2117_v50, %v2120_v0 }
 0x336   : > { %v1716_v12 = vpop.eup %1715  ;;  %v1355_v7 = vsel %vm1329_vm5, %v1326_v4, 0.0  ;;  %vm886_vm2 = vmor %vm2569_vm14, %vm870_vm9  ;;  %v630_v4 = vmax.f32 %v614_v55, 0.0005  ;;  %vm2572_vm14 = vcmask 64512  }
 0x337   : > { %v976_v9 = vmul.f32 0.6931472, %v1716_v12  ;;  %v1356_v35 = vadd.f32 %v1355_v7, %v1354_v44  ;;  %v1062_v38 = vsel %vm886_vm2, 1, %v2543_v22  ;;  %v997_v57 = vsub.f32 0.0, %v978_v37  ;;  %vm2573_vm2 = vmmov %vm2572_vm14 }
 0x338   : > { %1105 = vperm.xlu1 %1684, %v1062_v38   ;;  %v1232_v49 = vand.u32 2147483647, %v2571_v23  ;;  %vm2574_vm8 = vmmov %vm2573_vm2 }
 0x339   : > { %v2440_v24 = vmul.f32 %v1029_v5, %v997_v57  ;;  %v996_v59 = vsub.f32 0.0, %v976_v9  ;;  %v919_v5 = vsub.f32 1.0, %v645_v52 }
 0x33a   : > { %v1264_v9 = vmul.f32 4.5, %v1232_v49 }
 0x33b   : > { %v854_v40 = vpop.permute.xlu2 %853  ;;  %v2442_v17 = vmul.f32 %v1028_v54, %v996_v59  ;;  %v646_v59 = vmin.f32 %v630_v4, 0.9995 }
 0x33c   : > { %vm871_vm7 = vcmp.ne.s32.totalorder %v854_v40, 0  ;;  %v706_v13 = vpop.permute.xlu0 %705  ;;  %v1280_v40 = vmul.f32 %v1264_v9, %v1232_v49 }
 0x33d   : > { %vm887_vm13 = vmor %vm597_vm10, %vm871_vm7  ;;  %vm726_vm11 = vcmp.eq.s32.totalorder %v2036_v47, %v706_v13  ;;  %vm1248_vm7 = vcmp.le.f32.partialorder %v1232_v49, 0.11111111  ;;  %v920_v51 = vsub.f32 1.0, %v646_v59 }
 0x33e   : > { %vm822_vm4 = vmand %vm806_vm12, %vm726_vm11  ;;  %v1063_v48 = vsel %vm887_vm13, 1, %v2543_v22 }
 0x33f   : > { %v934_v44 = vsel %vm822_vm4, %v918_v36, %v644_v27  ;;  %v950_v1 = vsel %vm822_vm4, %v644_v27, %v918_v36  ;;  %1108 = vperm.xlu0 %1683, %v1063_v48   ;;  %v902_v2 = vsel %vm822_vm4, 0.25, %v2544_v26  ;;  %v1538_v36 = vadd.f32 -0.055555556, %v1232_v49 }
 0x340   : > { %1717 = vlog2.f32 %v950_v1  ;;  %v1014_v60 = vmul.f32 %v934_v44, %v934_v44 }
 0x342   : > { %v1030_v46 = vmul.f32 %v1014_v60, %v902_v2 }
 0x343   : > { %v789_v3 = vpop.permute.xlu2 %788 }
 0x344   : > { %vm807_vm10 = vcmp.eq.s32.totalorder %v789_v3, 1  ;;  %v856_v14 = vpop.permute.xlu0 %855 }
 0x345   : > { %v1327_v31 = vsel %vm807_vm10, %v1311_v32, 0.0  ;;  %vm872_vm3 = vcmp.ne.s32.totalorder %v856_v14, 0 }
 0x346   : > { %v1718_v18 = vpop.eup %1717  ;;  %v1357_v19 = vsel %vm1329_vm5, %v1327_v31, 0.0  ;;  %vm888_vm0 = vmor %vm598_vm1, %vm872_vm3  ;;  %v2575_v31 = vld [vmem:[#allocation3_spill] sm:$0xff] }
 0x347   : > { %v980_v28 = vmul.f32 0.6931472, %v1718_v18  ;;  %v1064_v63 = vsel %vm888_vm0, 1, %v2543_v22  ;;  %v1358_v58 = vadd.f32 %v1357_v19, %v1356_v35  ;;  %vm2576_vm3 = vmmov %vm2573_vm2 }
 0x348   : > { %1111 = vperm.xlu2 %1682, %v1064_v63  }
 0x349   : > { %v998_v41 = vsub.f32 0.0, %v980_v28 }
 0x34b   : > { %v2456_v61 = vmul.f32 %v1030_v46, %v998_v41 }
 0x34c   : > { %v712_v56 = vpop.permute.xlu0 %711  ;;  %v709_v34 = vpop.permute.xlu2 %708 }
 0x34d   : > { %vm728_vm15 = vcmp.eq.s32.totalorder %v2036_v47, %v712_v56  ;;  %vm727_vm6 = vcmp.eq.s32.totalorder %v2036_v47, %v709_v34 }
 0x34e   : > { %vm823_vm12 = vmand %vm807_vm10, %vm727_vm6 }
 0x34f   : > { %v935_v54 = vsel %vm823_vm12, %v919_v5, %v645_v52  ;;  %v951_v43 = vsel %vm823_vm12, %v645_v52, %v919_v5  ;;  %v903_v33 = vsel %vm823_vm12, 0.25, %v2544_v26  ;;  %vm2578_vm6 = vmmov %vm2573_vm2 }
 0x350   : > { %1719 = vlog2.f32 %v951_v43  ;;  %v1015_v22 = vmul.f32 %v935_v54, %v935_v54 }
 0x352   : > { %v1031_v37 = vmul.f32 %v1015_v22, %v903_v33 }
 0x355   : > { %v1070_v12 = vpop.permute.xlu0 %1069  ;;  %v1067_v7 = vpop.permute.xlu2 %1066 }
 0x356   : > { %v1720_v27 = vpop.eup %1719  ;;  %vm1114_vm1 = vcmp.eq.s32.totalorder %v1070_v12, 1  ;;  %vm1113_vm9 = vcmp.eq.s32.totalorder %v1067_v7, 1 }
 0x357   : > { %v982_v35 = vmul.f32 0.6931472, %v1720_v27  ;;  %v1130_v38 = vsel %vm1114_vm1, %v2280_v25, 0.0  ;;  %v1129_v57 = vsel %vm1113_vm9, %v2253_v45, 0.0  ;;  %v1312_v25 = vsel %vm1248_vm7, %v1280_v40, %v1538_v36  ;;  %vm2579_vm1 = vmmov %vm2573_vm2 }
 0x358   : > { %v1146_v39 = vsel %vm2572_vm14, %v1130_v38, 0.0  ;;  %v1145_v6 = vsel %vm2573_vm2, %v1129_v57, 0.0  ;;  %vm2580_vm14 = vmmov %vm2579_vm1 }
 0x359   : > { %v1147_v50 = vadd.f32 %v1146_v39, %v1145_v6  ;;  %v999_v0 = vsub.f32 0.0, %v982_v35 }
 0x35b   : > { %v2470_v13 = vmul.f32 %v1031_v37, %v999_v0 }
 0x35d   : > { %v1073_v48 = vpop.permute.xlu0 %1072  ;;  %v792_v44 = vpop.permute.xlu2 %791 }
 0x35e   : > { %vm1115_vm13 = vcmp.eq.s32.totalorder %v1073_v48, 1  ;;  %vm808_vm11 = vcmp.eq.s32.totalorder %v792_v44, 1 }
 0x35f   : > { %v1131_v45 = vsel %vm1115_vm13, %v2298_v8, 0.0  ;;  %vm824_vm4 = vmand %vm808_vm11, %vm728_vm15  ;;  %v1328_v1 = vsel %vm808_vm11, %v1312_v25, 0.0 }
 0x360   : > { %v1148_v60 = vsel %vm2574_vm8, %v1131_v45, 0.0  ;;  %v936_v21 = vsel %vm824_vm4, %v920_v51, %v646_v59  ;;  %v952_v20 = vsel %vm824_vm4, %v646_v59, %v920_v51  ;;  %v1359_v46 = vsel %vm1329_vm5, %v1328_v1, 0.0  ;;  %vm2577_vm5 = vmmov %vm2573_vm2 }
 0x361   : > { %v1149_v29 = vadd.f32 %v1148_v60, %v1147_v50  ;;  %1721 = vlog2.f32 %v952_v20  ;;  %v1016_v2 = vmul.f32 %v936_v21, %v936_v21  ;;  %v904_v3 = vsel %vm824_vm4, 0.25, %v2544_v26  ;;  %vm2581_vm11 = vmmov %vm2579_vm1 }
 0x362   : > { %v1360_v62 = vadd.f32 %v1359_v46, %v1358_v58  ;;  %vm2582_vm4 = vmmov %vm2579_vm1 }
 0x363   : > { %v1032_v32 = vmul.f32 %v1016_v2, %v904_v3  ;;  %vm2583_vm8 = vmmov %vm2579_vm1 }
 0x365   : > { %v1076_v14 = vpop.permute.xlu0 %1075 }
 0x366   : > { %vm1116_vm10 = vcmp.eq.s32.totalorder %v1076_v14, 1 }
 0x367   : > { %v1722_v8 = vpop.eup %1721  ;;  %v1132_v47 = vsel %vm1116_vm10, %v2575_v31, 0.0 }
 0x368   : > { %v1150_v18 = vsel %vm2576_vm3, %v1132_v47, 0.0  ;;  %v984_v19 = vmul.f32 0.6931472, %v1722_v8 }
 0x369   : > { %v1151_v28 = vadd.f32 %v1150_v18, %v1149_v29  ;;  %1361 = vadd.xlane.f32.xlu0 %v1360_v62 }
 0x36a   : > { %v1000_v63 = vsub.f32 0.0, %v984_v19 }
 0x36c   : > { %v1048_v52 = vmul.f32 %v1032_v32, %v1000_v63  ;;  %v1370_v63 = vld [vmem:[#allocation2] sm:$0x1] }
 0x36d   : > { %v1079_v41 = vpop.permute.xlu0 %1078 }
 0x36e   : > { %vm1117_vm0 = vcmp.eq.s32.totalorder %v1079_v41, 1  ;;  %v1097_v7 = vpop.permute.xlu1 %1096 }
 0x36f   : > { %v1133_v5 = vsel %vm1117_vm0, %v2326_v15, 0.0  ;;  %vm1123_vm7 = vcmp.eq.s32.totalorder %v1097_v7, 1  ;;  %vm2584_vm0 = vmmov %vm2579_vm1 }
 0x370   : > { %v1152_v26 = vsel %vm2577_vm5, %v1133_v5, 0.0  ;;  %v1139_v35 = vsel %vm1123_vm7, %v2400_v16, 0.0  ;;  %vm2585_vm5 = vmmov %vm2584_vm0 }
 0x371   : > { %v1153_v58 = vadd.f32 %v1152_v26, %v1151_v28  ;;  %v1164_v39 = vsel %vm2583_vm8, %v1139_v35, 0.0 }
 0x372   : > { %v1094_v4 = vpop.permute.xlu2 %1093 }
 0x373   : > { %vm1122_vm2 = vcmp.eq.s32.totalorder %v1094_v4, 1 }
 0x374   : > { %v1138_v27 = vsel %vm1122_vm2, %v2423_v42, 0.0 }
 0x375   : > { %v1082_v56 = vpop.permute.xlu0 %1081 }
 0x376   : > { %vm1118_vm15 = vcmp.eq.s32.totalorder %v1082_v56, 1 }
 0x377   : > { %v1134_v34 = vsel %vm1118_vm15, %v2340_v11, 0.0 }
 0x378   : > { %v1154_v54 = vsel %vm2578_vm6, %v1134_v34, 0.0  ;;  %vm2586_vm6 = vmmov %vm2584_vm0 }
 0x379   : > { %v1155_v43 = vadd.f32 %v1154_v54, %v1153_v58 }
 0x37a   : > { %v1103_v59 = vpop.permute.xlu2 %1102 }
 0x37b   : > { %vm1125_vm10 = vcmp.eq.s32.totalorder %v1103_v59, 1 }
 0x37c   : > { %v1141_v0 = vsel %vm1125_vm10, %v2440_v24, 0.0 }
 0x37d   : > { %v1085_v22 = vpop.permute.xlu0 %1084  ;;  %v1168_v16 = vsel %vm2585_vm5, %v1141_v0, 0.0 }
 0x37e   : > { %vm1119_vm12 = vcmp.eq.s32.totalorder %v1085_v22, 1 }
 0x37f   : > { %v1135_v33 = vsel %vm1119_vm12, %v2232_v53, 0.0 }
 0x380   : > { %v1156_v55 = vsel %vm2579_vm1, %v1135_v33, 0.0 }
 0x381   : > { %v1157_v23 = vadd.f32 %v1156_v55, %v1155_v43 }
 0x385   : > { %v1088_v49 = vpop.permute.xlu0 %1087 }
 0x386   : > { %vm1120_vm9 = vcmp.eq.s32.totalorder %v1088_v49, 1 }
 0x387   : > { %v1136_v15 = vsel %vm1120_vm9, %v2384_v30, 0.0  ;;  %v1162_v30 = vsel %vm2582_vm4, %v1138_v27, 0.0  ;;  %vm2587_vm9 = vmmov %vm2584_vm0 }
 0x388   : > { %v1158_v37 = vsel %vm2580_vm14, %v1136_v15, 0.0  ;;  %vm2588_vm14 = vmmov %vm2584_vm0 }
 0x389   : > { %v1159_v12 = vadd.f32 %v1158_v37, %v1157_v23 }
 0x38d   : > { %v1091_v11 = vpop.permute.xlu0 %1090 }
 0x38e   : > { %vm1121_vm13 = vcmp.eq.s32.totalorder %v1091_v11, 1 }
 0x38f   : > { %v1137_v53 = vsel %vm1121_vm13, %v2403_v10, 0.0 }
 0x390   : > { %v1160_v9 = vsel %vm2581_vm11, %v1137_v53, 0.0 }
 0x391   : > { %v1161_v38 = vadd.f32 %v1160_v9, %v1159_v12 }
 0x393   : > { %v1163_v57 = vadd.f32 %v1162_v30, %v1161_v38 }
 0x395   : > { %v1165_v6 = vadd.f32 %v1164_v39, %v1163_v57 }
 0x39a   : > { %v1100_v50 = vpop.permute.xlu0 %1099 }
 0x39b   : > { %vm1124_vm3 = vcmp.eq.s32.totalorder %v1100_v50, 1 }
 0x39c   : > { %v1140_v42 = vsel %vm1124_vm3, %v2442_v17, 0.0 }
 0x39d   : > { %v1166_v10 = vsel %vm2584_vm0, %v1140_v42, 0.0 }
 0x39e   : > { %v1167_v40 = vadd.f32 %v1166_v10, %v1165_v6 }
 0x3a0   : > { %v1169_v36 = vadd.f32 %v1168_v16, %v1167_v40 }
 0x3a2   : > { %v1112_v44 = vpop.permute.xlu2 %1111 }
 0x3a3   : > { %vm1128_vm12 = vcmp.eq.s32.totalorder %v1112_v44, 1 }
 0x3a4   : > { %v1144_v24 = vsel %vm1128_vm12, %v1048_v52, 0.0  ;;  %v1374_v52 = vld [vmem:[#allocation2 + $0x1] sm:$0x1] }
 0x3a5   : > { %v1174_v20 = vsel %vm2588_vm14, %v1144_v24, 0.0 }
 0x3aa   : > { %v1106_v51 = vpop.permute.xlu1 %1105 }
 0x3ab   : > { %vm1126_vm15 = vcmp.eq.s32.totalorder %v1106_v51, 1 }
 0x3ac   : > { %v1142_v48 = vsel %vm1126_vm15, %v2456_v61, 0.0 }
 0x3ad   : > { %v1170_v25 = vsel %vm2586_vm6, %v1142_v48, 0.0 }
 0x3ae   : > { %v1171_v45 = vadd.f32 %v1170_v25, %v1169_v36 }
 0x3b1   : > { %v1109_v1 = vpop.permute.xlu0 %1108 }
 0x3b2   : > { %vm1127_vm1 = vcmp.eq.s32.totalorder %v1109_v1, 1 }
 0x3b3   : > { %v1143_v17 = vsel %vm1127_vm1, %v2470_v13, 0.0 }
 0x3b4   : > { %v1172_v60 = vsel %vm2587_vm9, %v1143_v17, 0.0 }
 0x3b5   : > { %v1173_v21 = vadd.f32 %v1172_v60, %v1171_v45 }
 0x3b7   : > { %v1175_v29 = vadd.f32 %v1174_v20, %v1173_v21 }
 0x3b9   : > { %1176 = vadd.xlane.f32.xlu1 %v1175_v29 }
 0x3dc   : > { %v1362_v2 = vpop.xlane.xlu0 %1361 }
 0x3dd   : > { %v1363_v46 = vrot.slane %v1362_v2, 4 }
 0x3df   : > { %v1364_v61 = vadd.f32 %v1363_v46, %v1362_v2 }
 0x3e1   : > { %v1365_v3 = vrot.slane %v1364_v61, 2 }
 0x3e3   : > { %v1366_v8 = vadd.f32 %v1365_v3, %v1364_v61 }
 0x3e5   : > { %v1367_v18 = vrot.slane %v1366_v8, 1 }
 0x3e7   : > { %v1368_v28 = vadd.f32 %v1367_v18, %v1366_v8 }
 0x42c   : > { %v1177_v62 = vpop.xlane.xlu1 %1176 }
 0x42d   : > { %v1178_v32 = vrot.slane %v1177_v62, 4 }
 0x42f   : > { %v1179_v14 = vadd.f32 %v1178_v32, %v1177_v62 }
 0x431   : > { %v1180_v31 = vrot.slane %v1179_v14, 2 }
 0x433   : > { %v1181_v47 = vadd.f32 %v1180_v31, %v1179_v14 }
 0x435   : > { %v1182_v13 = vrot.slane %v1181_v47, 1 }
 0x437   : > { %v1183_v19 = vadd.f32 %v1182_v13, %v1181_v47 }
 0x439   : > { %1627 = vpush %v1183_v19 }
 0x43a   : > { %1629 = vpush %v1368_v28 }
 0x46a   : > { %s1628_s17 = spop %1627 }
 0x46b   : > { %v1371_v41 = vstv %s1628_s17  ;;  %s1630_s22 = spop %1629 }
 0x46c   : > { %v1372_v5 = vadd.f32 %v1371_v41, %v1370_v63  ;;  %v1375_v26 = vstv %s1630_s22 }
 0x46d   : > { %v1376_v58 = vadd.f32 %v1375_v26, %v1374_v52 }
 0x46e   : > { %1373 = vst [vmem:[#allocation2] sm:$0x1] %v1372_v5 }
 0x46f   : > { %1377 = vst [vmem:[#allocation2 + $0x1] sm:$0x1] %v1376_v58 }
 0x476   : > { %v1385_v56 = vld [vmem:[#allocation2] sm:$0x7] }
 0x477   : > { %1386 = vst [vmem:[%s348_s26] sm:$0x7] %v1385_v56 }
 0x478 PF: > { %s15_s20 = sadd.s32 1, %s1745_s20   ;;  %s2589_s18 = smov %s1741_s19 }
 0x479   : > { %p12_p5 = scmp.ge.s32.totalorder %s15_s20, 4   ;;  %s2590_s19 = smov %s2592_s21 }
 0x47b   :  { %14 = sbr.rel (!%p12_p5) target bundleno = 2 (0x2), region = 88 }

</bundles_post_ra>
